<compile_context>
chip_gen: v7x
topology: tpu7x:2x2x1
jax: 0.10.0
libtpu: 0.0.40
codegen_flags: <defaults>
</compile_context>

<pallas_src>
import functools

import jax
import jax.numpy as jnp
from jax import lax
from jax.experimental import pallas as pl
from jax.experimental.pallas import tpu as pltpu


# --------------------------------------------------------------------------
# Pallas kernel
# --------------------------------------------------------------------------
def dec_loss_kernel(p_locs_ref, p_conf_ref, t_locs_ref, t_conf_ref,
                    out_ref,
                    temp_s, rank_s, loc_s, npos_s, cpos_s,
                    *, a_real):
    """Grid = (batch block, phase, anchor j-block)."""
    p = pl.program_id(1)          # phase: 0 = CE/temp/loc pass, 1 = rank pass
    j = pl.program_id(2)          # anchor j-block
    nj = pl.num_programs(2)

    TB, C, TJ = p_conf_ref.shape
    A_pad = temp_s.shape[1]
    j0 = pl.multiple_of(j * TJ, TJ)

    # ----- init per-batch-block accumulators (very first step) --------------
    @pl.when(jnp.logical_and(p == 0, j == 0))
    def _():
        rank_s[...] = jnp.zeros_like(rank_s)
        loc_s[...] = jnp.zeros_like(loc_s)
        npos_s[...] = jnp.zeros_like(npos_s)
        cpos_s[...] = jnp.zeros_like(cpos_s)

    # ----- phase 0: blocked CE / temp / loc / pos partials -------------------
    @pl.when(p == 0)
    def _():
        tconf = t_conf_ref[...]                          # (TB,1,TJ) int32
        pos = tconf > 0
        posf = pos.astype(jnp.float32)

        pconf = p_conf_ref[...]                          # (TB,C,TJ)
        cmax = jnp.max(pconf, axis=1, keepdims=True)
        lse = jnp.log(jnp.sum(jnp.exp(pconf - cmax), axis=1, keepdims=True)) + cmax
        cls_iota = lax.broadcasted_iota(jnp.int32, (C, TJ), 0)[None]      # (1,C,TJ)
        onehot = (cls_iota == tconf).astype(jnp.float32)                  # (TB,C,TJ)
        gathered = jnp.sum(pconf * onehot, axis=1, keepdims=True)         # (TB,1,TJ)
        ce = lse - gathered                              # (TB,1,TJ)  (>= 0 under LSE)

        # temp = CE of negatives, 0 for positives (torch), -inf for padded anchors
        blk_lane = j0 + lax.broadcasted_iota(jnp.int32, (1, TJ), 1)
        valid = (blk_lane < a_real)[:, None, :]          # (1,1,TJ)
        temp = jnp.where(pos, 0.0, ce)
        temp = jnp.where(valid, temp, -jnp.inf)
        temp_s[:, pl.ds(j0, TJ)] = temp[:, 0, :]         # row-form store (TB,TJ)

        npos_s[...] += jnp.sum(posf, axis=2, keepdims=True)              # (TB,1,1)
        cpos_s[...] += jnp.sum(ce * posf, axis=2, keepdims=True)         # sum(ce*pos)

        # smooth-L1 (beta=1) over positive anchors, accumulated per j-block
        d = p_locs_ref[...] - t_locs_ref[...]            # (TB,4,TJ)
        ad = jnp.abs(d)
        sl1 = jnp.where(ad < 1.0, 0.5 * d * d, ad - 0.5)
        loc_s[...] += jnp.sum(jnp.sum(sl1 * posf, axis=2, keepdims=True),
                              axis=1, keepdims=True)     # (TB,1,1)

    # ----- phase 1: rank this j-block of anchors against all anchors ---------
    @pl.when(p == 1)
    def _():
        lane_i = lax.broadcasted_iota(jnp.int32, (1, A_pad), 1)   # global anchor idx
        jj_col = j0 + lax.broadcasted_iota(jnp.int32, (TJ, 1), 0)
        tie = jj_col < lane_i                             # (TJ,A_pad) hoisted once

        # column form of this j-block's temp: one (TB,TJ) transpose per step
        temp_cols = jnp.transpose(temp_s[:, pl.ds(j0, TJ)])       # (TJ, TB)
        ones_row = jnp.ones((1, TJ), jnp.bfloat16)

        for r in range(TB):
            temp_full = temp_s[pl.ds(r, 1), :]            # (1, A_pad)
            t_col = temp_cols[:, r:r + 1]                 # (TJ, 1)
            # m[jj, i] = temp[j0+jj] > temp[i]  OR (equal and j0+jj < i)
            m = jnp.logical_or(
                t_col > temp_full,
                jnp.logical_and(t_col == temp_full, tie))  # (TJ, A_pad)
            # reduce the j-block on the otherwise-idle MXU; 0/1 exact in bf16,
            # f32 accumulation -> counts exact for A < 2^24.
            cnt = jnp.dot(ones_row, m.astype(jnp.bfloat16),
                          preferred_element_type=jnp.float32)     # (1, A_pad)
            rank_s[pl.ds(r, 1), :] = rank_s[pl.ds(r, 1), :] + cnt

    # ----- finalize (last step of this batch block) ---------------------------
    @pl.when(jnp.logical_and(p == 1, j == nj - 1))
    def _():
        num_pos = npos_s[...]                                         # (TB,1,1)
        num_neg = jnp.minimum(3.0 * num_pos, float(a_real - 1))      # f32, exact
        # conf = sum(ce * pos) + sum(temp where rank < num_neg)
        # (temp == ce for negatives, 0 for positives, -inf only where rank>=a_real)
        neg_ce = jnp.where(rank_s[...] < num_neg[:, 0, :],
                           temp_s[...], 0.0)                          # (TB,A_pad)
        conf = cpos_s[...] + jnp.sum(neg_ce, axis=1, keepdims=True)[:, :, None]

        # lane-pack per-row partials: lane0 = loc, lane1 = conf, lane2 = num_pos
        lane_o = lax.broadcasted_iota(jnp.int32, (TB, 1, 128), 2)
        out_ref[...] = (jnp.where(lane_o == 0, loc_s[...], 0.0)
                        + jnp.where(lane_o == 1, conf, 0.0)
                        + jnp.where(lane_o == 2, num_pos, 0.0))


def dec_loss_pallas(p_locs, p_conf, t_locs, t_conf, *, tj=256, tb=8,
                    vmem_limit_bytes=48 * 1024 * 1024):
    """p_locs (B,A,4) f32, p_conf (B,A,C) f32, t_locs (B,A,4) f32, t_conf (B,A) i32."""
    B, A, C = p_conf.shape
    TJ = tj
    A_pad = -(-A // TJ) * TJ
    nj = A_pad // TJ
    # keep >= 2 batch blocks when possible so the "parallel" batch axis can be
    # split across TensorCores on multi-core chips (v7x); cap at tb.
    TB = max(1, min(tb, (B + 1) // 2))
    B_pad = -(-B // TB) * TB
    nb = B_pad // TB

    # anchor-major layout so A sits on lanes.
    p_locs_t = jnp.transpose(p_locs, (0, 2, 1))            # (B, 4, A)
    t_locs_t = jnp.transpose(t_locs, (0, 2, 1))            # (B, 4, A)
    p_conf_t = jnp.transpose(p_conf, (0, 2, 1))            # (B, C, A)
    t_conf_t = t_conf.astype(jnp.int32)[:, None, :]        # (B, 1, A)

    pad_b, pad_a = B_pad - B, A_pad - A
    if pad_b or pad_a:
        pads = ((0, pad_b), (0, 0), (0, pad_a))
        p_locs_t = jnp.pad(p_locs_t, pads)
        t_locs_t = jnp.pad(t_locs_t, pads)
        p_conf_t = jnp.pad(p_conf_t, pads)
        t_conf_t = jnp.pad(t_conf_t, pads)   # label 0 => never positive

    kernel = functools.partial(dec_loss_kernel, a_real=A)

    # block index j*(1-p): phase 0 walks j-blocks, phase 1 pins the (unused)
    # predictor blocks at block 0 so they are not re-read from HBM.
    grid_spec = pltpu.PrefetchScalarGridSpec(
        num_scalar_prefetch=0,
        grid=(nb, 2, nj),
        in_specs=[
            pl.BlockSpec((TB, 4, TJ), lambda b, p, j: (b, 0, j * (1 - p))),
            pl.BlockSpec((TB, C, TJ), lambda b, p, j: (b, 0, j * (1 - p))),
            pl.BlockSpec((TB, 4, TJ), lambda b, p, j: (b, 0, j * (1 - p))),
            pl.BlockSpec((TB, 1, TJ), lambda b, p, j: (b, 0, j * (1 - p))),
        ],
        out_specs=pl.BlockSpec((TB, 1, 128), lambda b, p, j: (b, 0, 0)),
        scratch_shapes=[
            pltpu.VMEM((TB, A_pad), jnp.float32),   # temp_s : masked temp, row form
            pltpu.VMEM((TB, A_pad), jnp.float32),   # rank_s : descending rank (f32, exact)
            pltpu.VMEM((TB, 1, 1), jnp.float32),    # loc_s  : smooth-L1 partial
            pltpu.VMEM((TB, 1, 1), jnp.float32),    # npos_s : num_pos partial
            pltpu.VMEM((TB, 1, 1), jnp.float32),    # cpos_s : sum(ce*pos) partial
        ],
    )

    partials = pl.pallas_call(
        kernel,
        out_shape=jax.ShapeDtypeStruct((B_pad, 1, 128), jnp.float32),
        grid_spec=grid_spec,
        compiler_params=pltpu.CompilerParams(
            dimension_semantics=("parallel", "arbitrary", "arbitrary"),
            vmem_limit_bytes=vmem_limit_bytes),
    )(p_locs_t, p_conf_t, t_locs_t, t_conf_t)

    loc_sum = jnp.sum(partials[:, 0, 0])
    conf_sum = jnp.sum(partials[:, 0, 1])
    npos = jnp.sum(partials[:, 0, 2])
    n = jnp.where(npos == 0.0, 1.0, npos)       # torch: if N == 0: N = 1
    return loc_sum / n, conf_sum / n


# --------------------------------------------------------------------------
# Glue (plain JAX): anchors + GT->anchor matching/encoding  (standard SSD)
# --------------------------------------------------------------------------
def make_anchors(img_height, img_width, stride=2,
                 scales=(0.1, 0.2), aspect_ratios=(1.0, 2.0)):
    fh, fw = img_height // stride, img_width // stride
    ys = (jnp.arange(fh, dtype=jnp.float32) + 0.5) / fh
    xs = (jnp.arange(fw, dtype=jnp.float32) + 0.5) / fw
    cy, cx = jnp.meshgrid(ys, xs, indexing="ij")
    whs = []
    for s in scales:
        for ar in aspect_ratios:
            whs.append((s * (ar ** 0.5), s / (ar ** 0.5)))
    whs = jnp.asarray(whs, dtype=jnp.float32)                    # (K, 2)
    K = whs.shape[0]
    cxcy = jnp.stack([cx, cy], axis=-1).reshape(-1, 1, 2)        # (fh*fw, 1, 2)
    cxcy = jnp.broadcast_to(cxcy, (fh * fw, K, 2)).reshape(-1, 2)
    wh = jnp.broadcast_to(whs[None], (fh * fw, K, 2)).reshape(-1, 2)
    return jnp.concatenate([cxcy, wh], axis=1)                   # (A, 4)


def encode_gt_to_anchors(gt_boxes, gt_label, *, anchors, match_thresh, variances):
    a_xy = anchors[:, :2]
    a_wh = anchors[:, 2:]
    a_pf = jnp.concatenate([a_xy - a_wh / 2, a_xy + a_wh / 2], axis=1)   # (A, 4)

    inter_min = jnp.maximum(gt_boxes[:, None, :2], a_pf[None, :, :2])
    inter_max = jnp.minimum(gt_boxes[:, None, 2:], a_pf[None, :, 2:])
    inter_wh = jnp.clip(inter_max - inter_min, 0.0)
    inter = inter_wh[..., 0] * inter_wh[..., 1]                          # (G, A)
    area_g = (gt_boxes[:, 2] - gt_boxes[:, 0]) * (gt_boxes[:, 3] - gt_boxes[:, 1])
    area_a = (a_pf[:, 2] - a_pf[:, 0]) * (a_pf[:, 3] - a_pf[:, 1])
    iou = inter / (area_g[:, None] + area_a[None, :] - inter)

    best_gt_iou = jnp.max(iou, axis=0)
    best_gt_idx = jnp.argmax(iou, axis=0)
    best_anchor_idx = jnp.argmax(iou, axis=1)
    best_gt_iou = best_gt_iou.at[best_anchor_idx].set(2.0)
    best_gt_idx = best_gt_idx.at[best_anchor_idx].set(jnp.arange(gt_boxes.shape[0]))

    matched = gt_boxes[best_gt_idx]
    labels = gt_label[best_gt_idx].astype(jnp.int32)
    labels = jnp.where(best_gt_iou < match_thresh, 0, labels)

    g_cxcy = (matched[:, :2] + matched[:, 2:]) / 2.0
    g_wh = matched[:, 2:] - matched[:, :2]
    enc_cxcy = (g_cxcy - a_xy) / (a_wh * variances[0])
    enc_wh = jnp.log(g_wh / a_wh) / variances[1]
    return jnp.concatenate([enc_cxcy, enc_wh], axis=1), labels


# --------------------------------------------------------------------------
# Pure-JAX reference (same math, different code path) for validation
# --------------------------------------------------------------------------
def dec_loss_ref(p_locs, p_conf, t_locs, t_conf):
    B, A, C = p_conf.shape
    pos = t_conf > 0
    num_pos = jnp.sum(pos, axis=1)
    d = p_locs - t_locs
    ad = jnp.abs(d)
    sl1 = jnp.where(ad < 1.0, 0.5 * d * d, ad - 0.5)
    loss_loc = jnp.sum(sl1 * pos[..., None].astype(jnp.float32))
    cmax = jnp.max(p_conf, axis=-1, keepdims=True)
    lse = jnp.log(jnp.sum(jnp.exp(p_conf - cmax), axis=-1, keepdims=True)) + cmax
    gathered = jnp.take_along_axis(p_conf, t_conf[..., None], axis=-1)
    ce = (lse - gathered)[..., 0]
    temp = jnp.where(pos, 0.0, ce)
    idx = jnp.arange(A)
    greater = temp[:, :, None] > temp[:, None, :]
    tie = (temp[:, :, None] == temp[:, None, :]) & (idx[:, None] < idx[None, :])
    rank = jnp.sum(greater | tie, axis=1)
    num_neg = jnp.minimum(3 * num_pos, A - 1)
    neg = rank < num_neg[:, None]
    sel = (pos | neg).astype(jnp.float32)
    loss_conf = jnp.sum(ce * sel)
    n = jnp.sum(num_pos).astype(jnp.float32)
    n = jnp.where(n == 0.0, 1.0, n)
    return loss_loc / n, loss_conf / n


# --------------------------------------------------------------------------
if __name__ == "__main__":
    key = jax.random.PRNGKey(0)
    img_h = img_w = 16
    num_classes = 2
    variances = (0.1, 0.2)
    B, G = 2, 3

    # A = 8*8*6 = 384 -> exercises anchor padding (A_pad=512) and nj=2 j-blocks
    anchors = make_anchors(img_h, img_w, aspect_ratios=(1.0, 2.0, 3.0))
    A = anchors.shape[0]

    k1, k2, k3, k4 = jax.random.split(key, 4)
    p_locs = jax.random.normal(k1, (B, A, 4), dtype=jnp.float32)
    p_conf = jax.random.normal(k2, (B, A, num_classes), dtype=jnp.float32)

    centers = jax.random.uniform(k3, (B, G, 2), minval=0.25, maxval=0.75)
    sizes = jax.random.uniform(k4, (B, G, 2), minval=0.1, maxval=0.3)
    gt_bboxes = jnp.concatenate([centers - sizes / 2.0, centers + sizes / 2.0],
                                axis=-1)            # (B, G, 4) corner form
    gt_labels = jnp.ones((B, G), dtype=jnp.int32)   # single foreground class

    encode = functools.partial(encode_gt_to_anchors, anchors=anchors,
                               match_thresh=0.5, variances=variances)
    t_locs, t_conf = jax.vmap(encode)(gt_bboxes, gt_labels)   # (B,A,4), (B,A)

    loss_loc, loss_conf = dec_loss_pallas(p_locs, p_conf, t_locs, t_conf)
    jax.block_until_ready((loss_loc, loss_conf))

    ref_loc, ref_conf = dec_loss_ref(p_locs, p_conf, t_locs, t_conf)
    assert jnp.allclose(loss_loc, ref_loc, rtol=1e-3, atol=1e-3), (loss_loc, ref_loc)
    assert jnp.allclose(loss_conf, ref_conf, rtol=1e-3, atol=1e-3), (loss_conf, ref_conf)

    print("KERNEL_OK")
</pallas_src>

<mosaic_0001>
module attributes {stable_mosaic.version = 11 : i64} {
  func.func @dec_loss_kernel(%arg0: i32, %arg1: i32, %arg2: i32, %arg3: memref<1x4x256xf32, #tpu.memory_space<vmem>>, %arg4: memref<1x2x256xf32, #tpu.memory_space<vmem>>, %arg5: memref<1x4x256xf32, #tpu.memory_space<vmem>>, %arg6: memref<1x1x256xi32, #tpu.memory_space<vmem>>, %arg7: memref<1x1x128xf32, #tpu.memory_space<vmem>>, %arg8: memref<1x512xf32, #tpu.memory_space<vmem>>, %arg9: memref<1x512xf32, #tpu.memory_space<vmem>>, %arg10: memref<1x1x1xf32, #tpu.memory_space<vmem>>, %arg11: memref<1x1x1xf32, #tpu.memory_space<vmem>>, %arg12: memref<1x1x1xf32, #tpu.memory_space<vmem>>) attributes {dimension_semantics = [#tpu.dimension_semantics<parallel>, #tpu.dimension_semantics<arbitrary>, #tpu.dimension_semantics<arbitrary>], iteration_bounds = array<i64: 2, 2, 2>, scalar_prefetch = 0 : i64, scratch_operands = 5 : i64, tpu.core_type = #tpu.core_type<tc>, window_params = [{transform_indices = @transform_0, window_bounds = array<i64: 1, 4, 256>}, {transform_indices = @transform_1, window_bounds = array<i64: 1, 2, 256>}, {transform_indices = @transform_2, window_bounds = array<i64: 1, 4, 256>}, {transform_indices = @transform_3, window_bounds = array<i64: 1, 1, 256>}, {transform_indices = @transform_4, window_bounds = array<i64: 1, 1, 128>}]} {
    %c256_i32 = arith.constant 256 : i32
    %0 = arith.muli %arg2, %c256_i32 : i32
    %1 = tpu.assume_multiple %0, 256 : i32
    %c0_i32 = arith.constant 0 : i32
    %2 = arith.cmpi eq, %arg1, %c0_i32 : i32
    %c0_i32_0 = arith.constant 0 : i32
    %3 = arith.cmpi eq, %arg2, %c0_i32_0 : i32
    %4 = arith.andi %2, %3 : i1
    %5 = arith.extui %4 : i1 to i32
    %c0_i32_1 = arith.constant 0 : i32
    %6 = arith.cmpi ne, %5, %c0_i32_1 : i32
    scf.if %6 {
      %cst = arith.constant 0.000000e+00 : f32
      %18 = vector.broadcast %cst : f32 to vector<1x512xf32>
      %c0 = arith.constant 0 : index
      %c0_8 = arith.constant 0 : index
      %19 = vector.load %arg9[%c0, %c0_8] : memref<1x512xf32, #tpu.memory_space<vmem>>, vector<1x512xf32>
      tpu.vector_store %arg9[%c0, %c0_8], %18 {strides = array<i32>} : memref<1x512xf32, #tpu.memory_space<vmem>>, vector<1x512xf32>,
      %cst_9 = arith.constant 0.000000e+00 : f32
      %20 = vector.broadcast %cst_9 : f32 to vector<1x1x1xf32>
      %c0_10 = arith.constant 0 : index
      %c0_11 = arith.constant 0 : index
      %c0_12 = arith.constant 0 : index
      %21 = vector.load %arg10[%c0_10, %c0_11, %c0_12] : memref<1x1x1xf32, #tpu.memory_space<vmem>>, vector<1x1x1xf32>
      tpu.vector_store %arg10[%c0_10, %c0_11, %c0_12], %20 {strides = array<i32>} : memref<1x1x1xf32, #tpu.memory_space<vmem>>, vector<1x1x1xf32>,
      %cst_13 = arith.constant 0.000000e+00 : f32
      %22 = vector.broadcast %cst_13 : f32 to vector<1x1x1xf32>
      %c0_14 = arith.constant 0 : index
      %c0_15 = arith.constant 0 : index
      %c0_16 = arith.constant 0 : index
      %23 = vector.load %arg11[%c0_14, %c0_15, %c0_16] : memref<1x1x1xf32, #tpu.memory_space<vmem>>, vector<1x1x1xf32>
      tpu.vector_store %arg11[%c0_14, %c0_15, %c0_16], %22 {strides = array<i32>} : memref<1x1x1xf32, #tpu.memory_space<vmem>>, vector<1x1x1xf32>,
      %cst_17 = arith.constant 0.000000e+00 : f32
      %24 = vector.broadcast %cst_17 : f32 to vector<1x1x1xf32>
      %c0_18 = arith.constant 0 : index
      %c0_19 = arith.constant 0 : index
      %c0_20 = arith.constant 0 : index
      %25 = vector.load %arg12[%c0_18, %c0_19, %c0_20] : memref<1x1x1xf32, #tpu.memory_space<vmem>>, vector<1x1x1xf32>
      tpu.vector_store %arg12[%c0_18, %c0_19, %c0_20], %24 {strides = array<i32>} : memref<1x1x1xf32, #tpu.memory_space<vmem>>, vector<1x1x1xf32>,
    } else {
    }
    %c0_i32_2 = arith.constant 0 : i32
    %7 = arith.cmpi eq, %arg1, %c0_i32_2 : i32
    %8 = arith.extui %7 : i1 to i32
    %c0_i32_3 = arith.constant 0 : i32
    %9 = arith.cmpi ne, %8, %c0_i32_3 : i32
    scf.if %9 {
      %c0 = arith.constant 0 : index
      %c0_8 = arith.constant 0 : index
      %c0_9 = arith.constant 0 : index
      %18 = vector.load %arg6[%c0, %c0_8, %c0_9] : memref<1x1x256xi32, #tpu.memory_space<vmem>>, vector<1x1x256xi32>
      %c0_i32_10 = arith.constant 0 : i32
      %19 = vector.broadcast %c0_i32_10 : i32 to vector<1x1x256xi32>
      %20 = arith.cmpi sgt, %18, %19 : vector<1x1x256xi32>
      %21 = arith.extui %20 : vector<1x1x256xi1> to vector<1x1x256xi32>
      %22 = arith.sitofp %21 : vector<1x1x256xi32> to vector<1x1x256xf32>
      %c0_11 = arith.constant 0 : index
      %c0_12 = arith.constant 0 : index
      %c0_13 = arith.constant 0 : index
      %23 = vector.load %arg4[%c0_11, %c0_12, %c0_13] : memref<1x2x256xf32, #tpu.memory_space<vmem>>, vector<1x2x256xf32>
      %cst = arith.constant dense<0xFF800000> : vector<1x256xf32>
      %24 = vector.multi_reduction <maximumf>, %23, %cst [1] : vector<1x2x256xf32> to vector<1x256xf32>
      %25 = vector.shape_cast %24 : vector<1x256xf32> to vector<1x1x256xf32>
      %26 = vector.broadcast %25 : vector<1x1x256xf32> to vector<1x2x256xf32>
      %27 = arith.subf %23, %26 : vector<1x2x256xf32>
      %28 = math.exp %27 : vector<1x2x256xf32>
      %cst_14 = arith.constant dense<0.000000e+00> : vector<1x256xf32>
      %29 = vector.multi_reduction <add>, %28, %cst_14 [1] : vector<1x2x256xf32> to vector<1x256xf32>
      %30 = vector.shape_cast %29 : vector<1x256xf32> to vector<1x1x256xf32>
      %31 = math.log %30 : vector<1x1x256xf32>
      %32 = arith.addf %31, %25 : vector<1x1x256xf32>
      %33 = tpu.iota {dimensions = array<i32: 0>} : vector<2x256xi32>
      %34 = vector.shape_cast %33 : vector<2x256xi32> to vector<1x2x256xi32>
      %35 = vector.broadcast %18 : vector<1x1x256xi32> to vector<1x2x256xi32>
      %36 = arith.cmpi eq, %34, %35 : vector<1x2x256xi32>
      %37 = arith.extui %36 : vector<1x2x256xi1> to vector<1x2x256xi32>
      %38 = arith.sitofp %37 : vector<1x2x256xi32> to vector<1x2x256xf32>
      %39 = arith.mulf %23, %38 : vector<1x2x256xf32>
      %cst_15 = arith.constant dense<0.000000e+00> : vector<1x256xf32>
      %40 = vector.multi_reduction <add>, %39, %cst_15 [1] : vector<1x2x256xf32> to vector<1x256xf32>
      %41 = vector.shape_cast %40 : vector<1x256xf32> to vector<1x1x256xf32>
      %42 = arith.subf %32, %41 : vector<1x1x256xf32>
      %43 = tpu.iota {dimensions = array<i32: 1>} : vector<1x256xi32>
      %44 = vector.broadcast %1 : i32 to vector<1x256xi32>
      %45 = arith.addi %44, %43 : vector<1x256xi32>
      %c384_i32 = arith.constant 384 : i32
      %46 = vector.broadcast %c384_i32 : i32 to vector<1x256xi32>
      %47 = arith.cmpi slt, %45, %46 : vector<1x256xi32>
      %48 = vector.shape_cast %47 : vector<1x256xi1> to vector<1x1x256xi1>
      %cst_16 = arith.constant 0.000000e+00 : f32
      %49 = vector.broadcast %cst_16 : f32 to vector<1x1x256xf32>
      %50 = arith.select %20, %49, %42 : vector<1x1x256xi1>, vector<1x1x256xf32>
      %cst_17 = arith.constant 0xFF800000 : f32
      %51 = vector.broadcast %cst_17 : f32 to vector<1x1x256xf32>
      %52 = arith.select %48, %50, %51 : vector<1x1x256xi1>, vector<1x1x256xf32>
      %53 = vector.shape_cast %52 : vector<1x1x256xf32> to vector<1x256xf32>
      %c0_18 = arith.constant 0 : index
      %54 = arith.index_cast %1 : i32 to index
      %55 = vector.load %arg8[%c0_18, %54] : memref<1x512xf32, #tpu.memory_space<vmem>>, vector<1x256xf32>
      tpu.vector_store %arg8[%c0_18, %54], %53 {strides = array<i32>} : memref<1x512xf32, #tpu.memory_space<vmem>>, vector<1x256xf32>,
      %c0_19 = arith.constant 0 : index
      %c0_20 = arith.constant 0 : index
      %c0_21 = arith.constant 0 : index
      %56 = vector.load %arg11[%c0_19, %c0_20, %c0_21] : memref<1x1x1xf32, #tpu.memory_space<vmem>>, vector<1x1x1xf32>
      %cst_22 = arith.constant dense<0.000000e+00> : vector<1x1xf32>
      %57 = vector.multi_reduction <add>, %22, %cst_22 [2] : vector<1x1x256xf32> to vector<1x1xf32>
      %58 = vector.shape_cast %57 : vector<1x1xf32> to vector<1x1x1xf32>
      %59 = arith.addf %56, %58 : vector<1x1x1xf32>
      %c0_23 = arith.constant 0 : index
      %c0_24 = arith.constant 0 : index
      %c0_25 = arith.constant 0 : index
      %60 = vector.load %arg11[%c0_23, %c0_24, %c0_25] : memref<1x1x1xf32, #tpu.memory_space<vmem>>, vector<1x1x1xf32>
      tpu.vector_store %arg11[%c0_23, %c0_24, %c0_25], %59 {strides = array<i32>} : memref<1x1x1xf32, #tpu.memory_space<vmem>>, vector<1x1x1xf32>,
      %c0_26 = arith.constant 0 : index
      %c0_27 = arith.constant 0 : index
      %c0_28 = arith.constant 0 : index
      %61 = vector.load %arg12[%c0_26, %c0_27, %c0_28] : memref<1x1x1xf32, #tpu.memory_space<vmem>>, vector<1x1x1xf32>
      %62 = arith.mulf %42, %22 : vector<1x1x256xf32>
      %cst_29 = arith.constant dense<0.000000e+00> : vector<1x1xf32>
      %63 = vector.multi_reduction <add>, %62, %cst_29 [2] : vector<1x1x256xf32> to vector<1x1xf32>
      %64 = vector.shape_cast %63 : vector<1x1xf32> to vector<1x1x1xf32>
      %65 = arith.addf %61, %64 : vector<1x1x1xf32>
      %c0_30 = arith.constant 0 : index
      %c0_31 = arith.constant 0 : index
      %c0_32 = arith.constant 0 : index
      %66 = vector.load %arg12[%c0_30, %c0_31, %c0_32] : memref<1x1x1xf32, #tpu.memory_space<vmem>>, vector<1x1x1xf32>
      tpu.vector_store %arg12[%c0_30, %c0_31, %c0_32], %65 {strides = array<i32>} : memref<1x1x1xf32, #tpu.memory_space<vmem>>, vector<1x1x1xf32>,
      %c0_33 = arith.constant 0 : index
      %c0_34 = arith.constant 0 : index
      %c0_35 = arith.constant 0 : index
      %67 = vector.load %arg3[%c0_33, %c0_34, %c0_35] : memref<1x4x256xf32, #tpu.memory_space<vmem>>, vector<1x4x256xf32>
      %c0_36 = arith.constant 0 : index
      %c0_37 = arith.constant 0 : index
      %c0_38 = arith.constant 0 : index
      %68 = vector.load %arg5[%c0_36, %c0_37, %c0_38] : memref<1x4x256xf32, #tpu.memory_space<vmem>>, vector<1x4x256xf32>
      %69 = arith.subf %67, %68 : vector<1x4x256xf32>
      %70 = math.absf %69 : vector<1x4x256xf32>
      %cst_39 = arith.constant 1.000000e+00 : f32
      %71 = vector.broadcast %cst_39 : f32 to vector<1x4x256xf32>
      %72 = arith.cmpf olt, %70, %71 : vector<1x4x256xf32>
      %cst_40 = arith.constant 5.000000e-01 : f32
      %73 = vector.broadcast %cst_40 : f32 to vector<1x4x256xf32>
      %74 = arith.mulf %73, %69 : vector<1x4x256xf32>
      %75 = arith.mulf %74, %69 : vector<1x4x256xf32>
      %cst_41 = arith.constant 5.000000e-01 : f32
      %76 = vector.broadcast %cst_41 : f32 to vector<1x4x256xf32>
      %77 = arith.subf %70, %76 : vector<1x4x256xf32>
      %78 = arith.select %72, %75, %77 : vector<1x4x256xi1>, vector<1x4x256xf32>
      %c0_42 = arith.constant 0 : index
      %c0_43 = arith.constant 0 : index
      %c0_44 = arith.constant 0 : index
      %79 = vector.load %arg10[%c0_42, %c0_43, %c0_44] : memref<1x1x1xf32, #tpu.memory_space<vmem>>, vector<1x1x1xf32>
      %80 = vector.broadcast %22 : vector<1x1x256xf32> to vector<1x4x256xf32>
      %81 = arith.mulf %78, %80 : vector<1x4x256xf32>
      %cst_45 = arith.constant dense<0.000000e+00> : vector<1x4xf32>
      %82 = vector.multi_reduction <add>, %81, %cst_45 [2] : vector<1x4x256xf32> to vector<1x4xf32>
      %83 = vector.shape_cast %82 : vector<1x4xf32> to vector<1x4x1xf32>
      %cst_46 = arith.constant dense<0.000000e+00> : vector<1x1xf32>
      %84 = vector.multi_reduction <add>, %83, %cst_46 [1] : vector<1x4x1xf32> to vector<1x1xf32>
      %85 = vector.shape_cast %84 : vector<1x1xf32> to vector<1x1x1xf32>
      %86 = arith.addf %79, %85 : vector<1x1x1xf32>
      %c0_47 = arith.constant 0 : index
      %c0_48 = arith.constant 0 : index
      %c0_49 = arith.constant 0 : index
      %87 = vector.load %arg10[%c0_47, %c0_48, %c0_49] : memref<1x1x1xf32, #tpu.memory_space<vmem>>, vector<1x1x1xf32>
      tpu.vector_store %arg10[%c0_47, %c0_48, %c0_49], %86 {strides = array<i32>} : memref<1x1x1xf32, #tpu.memory_space<vmem>>, vector<1x1x1xf32>,
    } else {
    }
    %c1_i32 = arith.constant 1 : i32
    %10 = arith.cmpi eq, %arg1, %c1_i32 : i32
    %11 = arith.extui %10 : i1 to i32
    %c0_i32_4 = arith.constant 0 : i32
    %12 = arith.cmpi ne, %11, %c0_i32_4 : i32
    scf.if %12 {
      %18 = tpu.iota {dimensions = array<i32: 1>} : vector<1x512xi32>
      %19 = tpu.iota {dimensions = array<i32: 0>} : vector<256x1xi32>
      %20 = vector.broadcast %1 : i32 to vector<256x1xi32>
      %21 = arith.addi %20, %19 : vector<256x1xi32>
      %22 = vector.broadcast %21 : vector<256x1xi32> to vector<256x512xi32>
      %23 = vector.broadcast %18 : vector<1x512xi32> to vector<256x512xi32>
      %24 = arith.cmpi slt, %22, %23 : vector<256x512xi32>
      %c0 = arith.constant 0 : index
      %25 = arith.index_cast %1 : i32 to index
      %26 = vector.load %arg8[%c0, %25] : memref<1x512xf32, #tpu.memory_space<vmem>>, vector<1x256xf32>
      %27 = tpu.transpose %26, [1, 0] : vector<1x256xf32> -> vector<256x1xf32>
      %cst = arith.constant 1.000000e+00 : bf16
      %28 = vector.broadcast %cst : bf16 to vector<1x256xbf16>
      %c0_8 = arith.constant 0 : index
      %c0_9 = arith.constant 0 : index
      %29 = vector.load %arg8[%c0_8, %c0_9] : memref<1x512xf32, #tpu.memory_space<vmem>>, vector<1x512xf32>
      %30 = vector.broadcast %27 : vector<256x1xf32> to vector<256x512xf32>
      %31 = vector.broadcast %29 : vector<1x512xf32> to vector<256x512xf32>
      %32 = arith.cmpf ogt, %30, %31 : vector<256x512xf32>
      %33 = vector.broadcast %27 : vector<256x1xf32> to vector<256x512xf32>
      %34 = vector.broadcast %29 : vector<1x512xf32> to vector<256x512xf32>
      %35 = arith.cmpf oeq, %33, %34 : vector<256x512xf32>
      %36 = arith.andi %35, %24 : vector<256x512xi1>
      %37 = arith.ori %32, %36 : vector<256x512xi1>
      %38 = arith.extui %37 : vector<256x512xi1> to vector<256x512xi32>
      %39 = arith.sitofp %38 : vector<256x512xi32> to vector<256x512xf32>
      %40 = arith.truncf %39 : vector<256x512xf32> to vector<256x512xbf16>
      %cst_10 = arith.constant dense<0.000000e+00> : vector<1x512xf32>
      %41 = tpu.matmul %28, %40, %cst_10 {dimension_numbers = #tpu.dot_dimension_numbers<[1], [0], [0], [1], [0, 0, 1, 1], [], []>} : vector<1x256xbf16>, vector<256x512xbf16>, vector<1x512xf32> -> vector<1x512xf32>
      %c0_11 = arith.constant 0 : index
      %c0_12 = arith.constant 0 : index
      %42 = vector.load %arg9[%c0_11, %c0_12] : memref<1x512xf32, #tpu.memory_space<vmem>>, vector<1x512xf32>
      %43 = arith.addf %42, %41 : vector<1x512xf32>
      %c0_13 = arith.constant 0 : index
      %c0_14 = arith.constant 0 : index
      %44 = vector.load %arg9[%c0_13, %c0_14] : memref<1x512xf32, #tpu.memory_space<vmem>>, vector<1x512xf32>
      tpu.vector_store %arg9[%c0_13, %c0_14], %43 {strides = array<i32>} : memref<1x512xf32, #tpu.memory_space<vmem>>, vector<1x512xf32>,
    } else {
    }
    %c1_i32_5 = arith.constant 1 : i32
    %13 = arith.cmpi eq, %arg1, %c1_i32_5 : i32
    %c1_i32_6 = arith.constant 1 : i32
    %14 = arith.cmpi eq, %arg2, %c1_i32_6 : i32
    %15 = arith.andi %13, %14 : i1
    %16 = arith.extui %15 : i1 to i32
    %c0_i32_7 = arith.constant 0 : i32
    %17 = arith.cmpi ne, %16, %c0_i32_7 : i32
    scf.if %17 {
      %c0 = arith.constant 0 : index
      %c0_8 = arith.constant 0 : index
      %c0_9 = arith.constant 0 : index
      %18 = vector.load %arg11[%c0, %c0_8, %c0_9] : memref<1x1x1xf32, #tpu.memory_space<vmem>>, vector<1x1x1xf32>
      %cst = arith.constant 3.000000e+00 : f32
      %19 = vector.broadcast %cst : f32 to vector<1x1x1xf32>
      %20 = arith.mulf %19, %18 : vector<1x1x1xf32>
      %cst_10 = arith.constant 3.830000e+02 : f32
      %21 = vector.broadcast %cst_10 : f32 to vector<1x1x1xf32>
      %22 = arith.minimumf %20, %21 : vector<1x1x1xf32>
      %c0_11 = arith.constant 0 : index
      %c0_12 = arith.constant 0 : index
      %23 = vector.load %arg9[%c0_11, %c0_12] : memref<1x512xf32, #tpu.memory_space<vmem>>, vector<1x512xf32>
      %24 = vector.shape_cast %22 : vector<1x1x1xf32> to vector<1x1xf32>
      %25 = vector.broadcast %24 : vector<1x1xf32> to vector<1x512xf32>
      %26 = arith.cmpf olt, %23, %25 : vector<1x512xf32>
      %c0_13 = arith.constant 0 : index
      %c0_14 = arith.constant 0 : index
      %27 = vector.load %arg8[%c0_13, %c0_14] : memref<1x512xf32, #tpu.memory_space<vmem>>, vector<1x512xf32>
      %cst_15 = arith.constant 0.000000e+00 : f32
      %28 = vector.broadcast %cst_15 : f32 to vector<1x512xf32>
      %29 = arith.select %26, %27, %28 : vector<1x512xi1>, vector<1x512xf32>
      %c0_16 = arith.constant 0 : index
      %c0_17 = arith.constant 0 : index
      %c0_18 = arith.constant 0 : index
      %30 = vector.load %arg12[%c0_16, %c0_17, %c0_18] : memref<1x1x1xf32, #tpu.memory_space<vmem>>, vector<1x1x1xf32>
      %cst_19 = arith.constant dense<0.000000e+00> : vector<1xf32>
      %31 = vector.multi_reduction <add>, %29, %cst_19 [1] : vector<1x512xf32> to vector<1xf32>
      %32 = vector.shape_cast %31 : vector<1xf32> to vector<1x1xf32>
      %33 = vector.shape_cast %32 : vector<1x1xf32> to vector<1x1x1xf32>
      %34 = arith.addf %30, %33 : vector<1x1x1xf32>
      %35 = tpu.iota {dimensions = array<i32: 2>} : vector<1x1x128xi32>
      %c0_i32_20 = arith.constant 0 : i32
      %36 = vector.broadcast %c0_i32_20 : i32 to vector<1x1x128xi32>
      %37 = arith.cmpi eq, %35, %36 : vector<1x1x128xi32>
      %c0_21 = arith.constant 0 : index
      %c0_22 = arith.constant 0 : index
      %c0_23 = arith.constant 0 : index
      %38 = vector.load %arg10[%c0_21, %c0_22, %c0_23] : memref<1x1x1xf32, #tpu.memory_space<vmem>>, vector<1x1x1xf32>
      %cst_24 = arith.constant 0.000000e+00 : f32
      %39 = vector.shape_cast %38 : vector<1x1x1xf32> to vector<1x1x1xf32>
      %40 = vector.broadcast %39 : vector<1x1x1xf32> to vector<1x1x128xf32>
      %41 = vector.broadcast %cst_24 : f32 to vector<1x1x128xf32>
      %42 = arith.select %37, %40, %41 : vector<1x1x128xi1>, vector<1x1x128xf32>
      %c1_i32_25 = arith.constant 1 : i32
      %43 = vector.broadcast %c1_i32_25 : i32 to vector<1x1x128xi32>
      %44 = arith.cmpi eq, %35, %43 : vector<1x1x128xi32>
      %cst_26 = arith.constant 0.000000e+00 : f32
      %45 = vector.shape_cast %34 : vector<1x1x1xf32> to vector<1x1x1xf32>
      %46 = vector.broadcast %45 : vector<1x1x1xf32> to vector<1x1x128xf32>
      %47 = vector.broadcast %cst_26 : f32 to vector<1x1x128xf32>
      %48 = arith.select %44, %46, %47 : vector<1x1x128xi1>, vector<1x1x128xf32>
      %49 = arith.addf %42, %48 : vector<1x1x128xf32>
      %c2_i32 = arith.constant 2 : i32
      %50 = vector.broadcast %c2_i32 : i32 to vector<1x1x128xi32>
      %51 = arith.cmpi eq, %35, %50 : vector<1x1x128xi32>
      %cst_27 = arith.constant 0.000000e+00 : f32
      %52 = vector.shape_cast %18 : vector<1x1x1xf32> to vector<1x1x1xf32>
      %53 = vector.broadcast %52 : vector<1x1x1xf32> to vector<1x1x128xf32>
      %54 = vector.broadcast %cst_27 : f32 to vector<1x1x128xf32>
      %55 = arith.select %51, %53, %54 : vector<1x1x128xi1>, vector<1x1x128xf32>
      %56 = arith.addf %49, %55 : vector<1x1x128xf32>
      %c0_28 = arith.constant 0 : index
      %c0_29 = arith.constant 0 : index
      %c0_30 = arith.constant 0 : index
      %57 = vector.load %arg7[%c0_28, %c0_29, %c0_30] : memref<1x1x128xf32, #tpu.memory_space<vmem>>, vector<1x1x128xf32>
      tpu.vector_store %arg7[%c0_28, %c0_29, %c0_30], %56 {strides = array<i32>} : memref<1x1x128xf32, #tpu.memory_space<vmem>>, vector<1x1x128xf32>,
    } else {
    }
    return
  }
  func.func @transform_0(%arg0: i32, %arg1: i32, %arg2: i32) -> (i32, i32, i32) {
    %c1_i32 = arith.constant 1 : i32
    %0 = arith.subi %c1_i32, %arg1 : i32
    %1 = arith.muli %arg2, %0 : i32
    %c0_i32 = arith.constant 0 : i32
    %c0_i32_0 = arith.constant 0 : i32
    return %arg0, %c0_i32, %1 : i32, i32, i32
  }
  func.func @transform_1(%arg0: i32, %arg1: i32, %arg2: i32) -> (i32, i32, i32) {
    %c1_i32 = arith.constant 1 : i32
    %0 = arith.subi %c1_i32, %arg1 : i32
    %1 = arith.muli %arg2, %0 : i32
    %c0_i32 = arith.constant 0 : i32
    %c0_i32_0 = arith.constant 0 : i32
    return %arg0, %c0_i32, %1 : i32, i32, i32
  }
  func.func @transform_2(%arg0: i32, %arg1: i32, %arg2: i32) -> (i32, i32, i32) {
    %c1_i32 = arith.constant 1 : i32
    %0 = arith.subi %c1_i32, %arg1 : i32
    %1 = arith.muli %arg2, %0 : i32
    %c0_i32 = arith.constant 0 : i32
    %c0_i32_0 = arith.constant 0 : i32
    return %arg0, %c0_i32, %1 : i32, i32, i32
  }
  func.func @transform_3(%arg0: i32, %arg1: i32, %arg2: i32) -> (i32, i32, i32) {
    %c1_i32 = arith.constant 1 : i32
    %0 = arith.subi %c1_i32, %arg1 : i32
    %1 = arith.muli %arg2, %0 : i32
    %c0_i32 = arith.constant 0 : i32
    %c0_i32_0 = arith.constant 0 : i32
    return %arg0, %c0_i32, %1 : i32, i32, i32
  }
  func.func @transform_4(%arg0: i32, %arg1: i32, %arg2: i32) -> (i32, i32, i32) {
    %c0_i32 = arith.constant 0 : i32
    %c0_i32_0 = arith.constant 0 : i32
    %c0_i32_1 = arith.constant 0 : i32
    return %arg0, %c0_i32, %c0_i32_0 : i32, i32, i32
  }
}

</mosaic_0001>

<bundles_post_ra>
// kernel: tpu_custom_call.1
= control target key start
LH: loop header
LB: loop body
LE: loop exit
PB: predicated region body
PF: predicated region fallthrough
CT: control target
= control target key end

     0   :  { %s4261_s0 = inlined_call_operand.hbm [shape: f32[2,4,512], index: 0, kind: input, shape index: {}]   ;;  %s4262_s1 = inlined_call_operand.hbm [shape: f32[2,2,512], index: 1, kind: input, shape index: {}]   ;;  %s4263_s2 = inlined_call_operand.hbm [shape: f32[2,4,512], index: 2, kind: input, shape index: {}]   ;;  %s4264_s3 = inlined_call_operand.vmem [shape: s32[2,1,512], index: 3, kind: input, shape index: {}]   ;;  %s4265_s4 = inlined_call_operand.hbm [shape: f32[2,1,128], index: 4, kind: output, shape index: {}]  }
   0x1   :  { %4282 = sst [smem:[#allocation29_spill]] %s4262_s1 }
   0x2   :  { %9 = vsyncpa [#allocation8], 0 }
   0x3   :  { %11 = vsyncpa [#allocation8 + $0x1], 0 }
   0x4   :  { %12 = vsyncpa [#allocation11], 0 }
   0x5   :  { %14 = vsyncpa [#allocation11 + $0x1], 0 }
   0x6   :  { %15 = vsyncpa [#allocation9], 0 }
   0x7   :  { %17 = vsyncpa [#allocation9 + $0x1], 0  ;;  %s3050_s15 = smov 0   ;;  %s3052_s16 = smov 0  }
   0x8   :  { %s3054_s17 = smov 0   ;;  %s3056_s18 = smov 0  }
   0x9   :  { %s3058_s19 = smov 0   ;;  %s3060_s20 = smov 0  }
   0xa   :  { %s3062_s21 = smov 0   ;;  %s3064_s22 = smov 0  }
   0xb   :  { %s3066_s23 = smov 0   ;;  %s3068_s24 = smov 0  }
   0xc   :  { %s3070_s25 = smov 0   ;;  %s3072_s26 = smov 0  }
   0xd   :  { %s3074_s27 = smov 0  }
   0xe LB: > { %4283 = sst [smem:[#allocation17_spill]] %s2962_s15  ;;  %s3116_s28 = sadd.s32 4294967295, %s3010_s27   ;;  %s3010_s27 = sphi %s3074_s27, %s23_s27   ;;  %s3006_s26 = sphi %s3072_s26, %s4338_s26   ;;  %s3002_s25 = sphi %s3070_s25, %s4337_s25   ;;  %s2998_s24 = sphi %s3068_s24, %s4336_s24   ;;  %s2994_s23 = sphi %s3066_s23, %s4335_s23   ;;  %s2990_s22 = sphi %s3064_s22, %s4334_s22   ;;  %s2986_s21 = sphi %s3062_s21, %s4333_s21   ;;  %s2982_s20 = sphi %s3060_s20, %s4344_s20   ;;  %s2978_s19 = sphi %s3058_s19, %s4343_s19   ;;  %s2974_s18 = sphi %s3056_s18, %s4342_s18   ;;  %s2970_s17 = sphi %s3054_s17, %s4330_s17   ;;  %s2966_s16 = sphi %s3052_s16, %s4341_s16   ;;  %s2962_s15 = sphi %s3050_s15, %s4340_s15  }
   0xf   : > { %4284 = sst [smem:[#allocation18_spill]] %s2970_s17  ;;  %s35_s30 = sadd.s32 1, %s2998_s24 }
  0x10   : > { %4285 = sst [smem:[#allocation19_spill]] %s2982_s20  ;;  %s38_s5 = sadd.s32 1, %s3002_s25 }
  0x11   : > { %4286 = sst [smem:[#allocation20_spill]] %s2998_s24  ;;  %p36_p0 = scmp.ge.s32.totalorder %s35_s30, 2 }
  0x12   : > { %4287 = sst [smem:[#allocation21_spill]] %s3002_s25  ;;  %s42_s6 = sadd.s32 1, %s3006_s26 }
  0x13   : > { %4288 = sst [smem:[#allocation22_spill]] %s3006_s26  ;;  %s46_s7 = ssub.s32 1, %s3002_s25 }
  0x14   : > { %s55_s8 = sadd.s32 1, %s2982_s20  ;;  %s4346_s30 = smov (%p36_p0, %s35_s30), 0 }
  0x15   : > { %4289 = sst [smem:[#allocation23_spill]] %s4346_s30  ;;  %s4348_s5 = smov (!%p36_p0, %s38_s5), %s3002_s25 }
  0x16   : > { %s3128_s9 = smul.u32 %s2998_s24, %s46_s7  ;;  %p62_p1 = scmp.ne.s32.totalorder %s2982_s20, %s2978_s19 }
  0x17   : > { %p40_p2 = scmp.ge.s32.totalorder %s4348_s5, 2  ;;  %p63_p3 = scmp.eq.s32.totalorder %s3010_s27, 0 }
  0x18   : > { %p68_p4 = scmp.ne.s32.totalorder %s2978_s19, %s2974_s18  ;;  %p69_p5 = scmp.eq.s32.totalorder %s3116_s28, 0 }
  0x19   : > { %s4350_s5 = smov (%p40_p2, %s4348_s5), 0  ;;  %s4352_s6 = smov (!%p40_p2, %s42_s6), %s3006_s26 }
  0x1a   : > { %4290 = sst [smem:[#allocation24_spill]] %s4350_s5  ;;  %s48_s10 = ssub.s32 1, %s4350_s5 }
  0x1b   : > { %p3140_p6 = por %p63_p3, %p62_p1  ;;  %p44_p7 = scmp.ge.s32.totalorder %s4352_s6, 2 }
  0x1c   : > { %s49_s12 = smul.u32 %s48_s10, %s4346_s30  ;;  %p3145_p8 = por %p69_p5, %p68_p4 }
  0x1d   : > { %s177_s14 = sadd.s32 1, %s2970_s17  ;;  %s4354_s6 = smov (%p44_p7, %s4352_s6), 0 }
  0x1e   : > { %s4292_s13 = scalar_select %p3145_p8, 1, 0 }
  0x1f   : > { %4293 = sst [smem:[#allocation25_spill]] %s4354_s6  ;;  %s51_s18 = ssub.s32 %s3128_s9, %s49_s12 }
  0x20   : > { %p187_p9 = scmp.ne.s32.totalorder %s2970_s17, %s2966_s16  ;;  %s50_s7 = ssub.s32 %s3006_s26, %s4354_s6 }
  0x21   : > { %p188_p10 = scmp.eq.s32.totalorder %s3116_s28, 7  ;;  %s52_s29 = sor.u32 %s51_s18, %s50_s7 }
  0x22   : > { %p175_p11 = scmp.eq.s32.totalorder %s50_s7, 0  ;;  %p53_p12 = scmp.eq.s32.totalorder %s52_s29, 0 }
  0x23   : > { %p3158_p13 = por %p188_p10, %p187_p9  ;;  %p193_p0 = scmp.ne.s32.totalorder %s2966_s16, %s2962_s15 }
  0x24   : > { %s3163_s5 = scalar_select %p175_p11, %s2970_s17, %s177_s14  }
  0x25   : > { %s4294_s10 = scalar_select %p3158_p13, 1, 0 }
  0x26   : > { %4295 = sst [smem:[#allocation26_spill]] %s3163_s5  ;;  %s4297_s25 = sadd.s32 4294967294, %s3010_s27  }
  0x27   : > { %s3166_s30 = scalar_select %p53_p12, %s2982_s20, %s55_s8  }
  0x28   : > { %p194_p1 = scmp.eq.s32.totalorder %s4297_s25, 7  ;;  %p2652_p2 = scmp.lt.s32.totalorder %s3010_s27, 8 }
  0x29   : > { %4296 = sst [smem:[#allocation27_spill]] %s3166_s30  ;;  %s3178_s18 = sand.u32 1, %s2982_s20  }
  0x2a   : > { %p3173_p3 = por %p194_p1, %p193_p0  ;;  %s2347_s29 = sshll.u32 %s3128_s9, 1 }
  0x2b   : > { %s2348_s7 = sshll.u32 %s3006_s26, 2  ;;  %p3186_p4 = pnand %p2652_p2, %p3140_p6 }
  0x2c   : > { %s4298_s12 = scalar_select %p3173_p3, 1, 0 }
  0x2d   : > { %s3182_s6 = sadd.s32 %s2348_s7, %s2347_s29  ;;  %s237_s25 = sand.u32 1, %s3010_s27  }
  0x2e   : > { %4299 = sst [smem:[#allocation28_spill]] %s4298_s12  ;;  %s2350_s14 = sshll.u32 %s3178_s18, 2 }
  0x2f   : > { %s4300_s8 = scalar_select %p3186_p4, 1, 0 }
  0x30   : > { %s2353_s24 = sshll.u32 %s3182_s6, 5  ;;  %s4301_s1 = sld [smem:[#allocation29_spill]] }
  0x31   : > { %s241_s9 = scalar_lea.vmem [#allocation10], %s2350_s14  ;;  %s3201_s29 = scalar_lea.sflag [#allocation11], %s237_s25 }
  0x32   : > { %s253_s11 = sshll.u32 %s241_s9, 4  ;;  %p3207_p7 = pneg %p3186_p4  ;;  %s3198_s11 = int_to_ptr.vmem [resolvable:$true] %s253_s11 }
  0x36   : > { %s3196_s20 = scalar_lea.hbm %s4301_s1, %s2353_s24  ;;  %s2783_s5 = scalar_lea.hbm %s4301_s1, 256 }
  0x37   : > { %s2778_s7 = scalar_lea.hbm %s3196_s20, 64  ;;  %p2784_p11 = scmp.lt.u32.totalorder %s3196_s20, %s4301_s1 }
  0x38   : > { %p2779_p6 = scmp.ne.s32.totalorder %s3196_s20, %s2778_s7  ;;  %p2785_p12 = scmp.lt.u32.totalorder %s2783_s5, %s2778_s7 }
  0x39   : > { %p2787_p1 = scmp.lt.u32.totalorder %s2778_s7, %s3196_s20 }
  0x3a   : > { %p2781_p9 = pnand %p3207_p7, %p2779_p6  ;;  %p2786_p0 = por %p2785_p12, %p2784_p11 }
  0x3c   : > { %p2782_p10 = pneg %p2781_p9  ;;  %p2788_p2 = por %p2787_p1, %p2786_p0 }
  0x3e   : > { %p2789_p5 = pnand %p2788_p2, %p2782_p10 }
  0x40   : > { %2792 = shalt.err (!%p2789_p5)
}
  0x41   : > { %s2793_s25 = scalar_lea.vmem %s3198_s11, 64  ;;  %s3012_s24 = smov [#allocation10]  }
  0x42   : > { %p2794_p6 = scmp.ne.s32.totalorder %s3198_s11, %s2793_s25  ;;  %s2798_s30 = sshll.u32 %s3012_s24, 4  ;;  %s2799_s30 = int_to_ptr.vmem [resolvable:$false] %s2798_s30 }
  0x43   : > { %s2800_s14 = scalar_lea.vmem %s2799_s30, 128  ;;  %p2801_p13 = scmp.lt.s32.totalorder %s3198_s11, %s2799_s30 }
  0x44   : > { %p2796_p9 = pnand %p2794_p6, %p3207_p7  ;;  %p2802_p8 = scmp.lt.s32.totalorder %s2800_s14, %s2793_s25 }
  0x46   : > { %p2797_p3 = pneg %p2796_p9  ;;  %p2803_p11 = por %p2802_p8, %p2801_p13 }
  0x48   : > { %p2804_p12 = pnand %p2803_p11, %p2797_p3 }
  0x4a   : > { %2807 = shalt.err (!%p2804_p12)
}
  0x4b   : > { %2644 = dma.hbm_to_vmem [thread:$0]  (!%p3186_p4), %s3196_s20, 64, %s3198_s11, %s3201_s29  }
  0x4c   : > { %p297_p5 = scmp.lt.s32.totalorder %s3010_s27, 9  ;;  %p4303_p10 = scmp.ge.s32.totalorder %s3010_s27, 1 }
  0x4d   : > { %s4278_s5 = sshll.u32 %s3178_s18, 3  ;;  %s4277_s9 = sshll.u32 %s3182_s6, 6 }
  0x4e   : > { %p3234_p0 = pnand %p4303_p10, %p297_p5  ;;  %s3245_s30 = scalar_lea.hbm %s4261_s0, %s4277_s9 }
  0x4f   : > { %s218_s20 = scalar_lea.vmem [#allocation7], %s4278_s5  ;;  %s215_s14 = scalar_lea.sflag [#allocation8], %s3178_s18 }
  0x50   : > { %s4304_s7 = scalar_select %p3234_p0, 1, 0 }
  0x51   : > { %s230_s11 = sshll.u32 %s218_s20, 4  ;;  %s2808_s1 = scalar_lea.hbm %s3245_s30, 128  ;;  %s231_s11 = int_to_ptr.vmem [resolvable:$true] %s230_s11 }
  0x52   : > { %p2809_p8 = scmp.ne.s32.totalorder %s3245_s30, %s2808_s1  ;;  %s2813_s25 = scalar_lea.hbm %s4261_s0, 512 }
  0x53   : > { %p2814_p1 = scmp.lt.u32.totalorder %s3245_s30, %s4261_s0  ;;  %p2815_p2 = scmp.lt.u32.totalorder %s2813_s25, %s2808_s1 }
  0x54   : > { %p2811_p13 = pnand %p2809_p8, %p3207_p7  ;;  %p2817_p9 = scmp.lt.u32.totalorder %s2808_s1, %s3245_s30 }
  0x55   : > { %p2816_p6 = por %p2815_p2, %p2814_p1 }
  0x56   : > { %p2812_p3 = pneg %p2811_p13 }
  0x57   : > { %p2818_p11 = por %p2817_p9, %p2816_p6 }
  0x59   : > { %p2819_p12 = pnand %p2818_p11, %p2812_p3 }
  0x5b   : > { %2822 = shalt.err (!%p2819_p12)
}
  0x5c   : > { %s2823_s20 = scalar_lea.vmem %s231_s11, 128  ;;  %s3013_s5 = smov [#allocation7]  }
  0x5d   : > { %p2824_p5 = scmp.ne.s32.totalorder %s231_s11, %s2823_s20  ;;  %s2828_s15 = sshll.u32 %s3013_s5, 4  ;;  %s2829_s15 = int_to_ptr.vmem [resolvable:$false] %s2828_s15 }
  0x5e   : > { %s2830_s17 = scalar_lea.vmem %s2829_s15, 256  ;;  %p2831_p13 = scmp.lt.s32.totalorder %s231_s11, %s2829_s15 }
  0x5f   : > { %p2826_p10 = pnand %p2824_p5, %p3207_p7  ;;  %p2832_p0 = scmp.lt.s32.totalorder %s2830_s17, %s2823_s20 }
  0x61   : > { %p2827_p8 = pneg %p2826_p10  ;;  %p2833_p4 = por %p2832_p0, %p2831_p13 }
  0x63   : > { %p2834_p1 = pnand %p2833_p4, %p2827_p8 }
  0x65   : > { %2837 = shalt.err (!%p2834_p1)
}
  0x66   : > { %p4305_p2 = scmp.ne.s32.totalorder %s4300_s8, 0  ;;  %s4306_s1 = sshll.u32 %s3182_s6, 6 }
  0x67   : > { %s3272_s25 = scalar_lea.hbm %s4263_s2, %s4306_s1  ;;  %s4307_s5 = sshll.u32 %s3178_s18, 3 }
  0x68   : > { %2641 = dma.hbm_to_vmem [thread:$0]  (!%p4305_p2), %s3245_s30, 128, %s231_s11, %s215_s14  }
  0x69   : > { %s264_s15 = scalar_lea.vmem [#allocation12], %s4307_s5  ;;  %s2838_s20 = scalar_lea.hbm %s3272_s25, 128 }
  0x6a   : > { %s276_s24 = sshll.u32 %s264_s15, 4  ;;  %p2839_p4 = scmp.ne.s32.totalorder %s3272_s25, %s2838_s20  ;;  %s277_s24 = int_to_ptr.vmem [resolvable:$true] %s276_s24 }
  0x6b   : > { %s2843_s11 = scalar_lea.hbm %s4263_s2, 512  ;;  %p2844_p6 = scmp.lt.u32.totalorder %s3272_s25, %s4263_s2 }
  0x6c   : > { %p2841_p0 = pnand %p2839_p4, %p3207_p7  ;;  %p2845_p9 = scmp.lt.u32.totalorder %s2843_s11, %s2838_s20 }
  0x6d   : > { %p2847_p12 = scmp.lt.u32.totalorder %s2838_s20, %s3272_s25 }
  0x6e   : > { %p2842_p3 = pneg %p2841_p0  ;;  %p2846_p11 = por %p2845_p9, %p2844_p6 }
  0x70   : > { %p2848_p5 = por %p2847_p12, %p2846_p11 }
  0x72   : > { %p2849_p10 = pnand %p2848_p5, %p2842_p3 }
  0x74   : > { %2852 = shalt.err (!%p2849_p10)
}
  0x75   : > { %s2853_s18 = scalar_lea.vmem %s277_s24, 128  ;;  %s3014_s1 = smov [#allocation12]  }
  0x76   : > { %p2854_p8 = scmp.ne.s32.totalorder %s277_s24, %s2853_s18  ;;  %s2858_s12 = sshll.u32 %s3014_s1, 4  ;;  %s2859_s12 = int_to_ptr.vmem [resolvable:$false] %s2858_s12 }
  0x77   : > { %s2860_s9 = scalar_lea.vmem %s2859_s12, 256  ;;  %p2861_p4 = scmp.lt.s32.totalorder %s277_s24, %s2859_s12 }
  0x78   : > { %p2856_p13 = pnand %p2854_p8, %p3207_p7  ;;  %p2862_p0 = scmp.lt.s32.totalorder %s2860_s9, %s2853_s18 }
  0x7a   : > { %p2857_p1 = pneg %p2856_p13  ;;  %p2863_p2 = por %p2862_p0, %p2861_p4 }
  0x7c   : > { %p2864_p6 = pnand %p2863_p2, %p2857_p1 }
  0x7e   : > { %2867 = shalt.err (!%p2864_p6)
}
  0x7f   : > { %p4308_p9 = scmp.ne.s32.totalorder %s4300_s8, 0  ;;  %p4309_p3 = scmp.ne.s32.totalorder %s4304_s7, 0 }
  0x80   : > { %s303_s26 = sand.u32 (!%p4309_p3), 1, %s2978_s19   ;;  %p4310_p7 = scmp.ne.s32.totalorder (!%p4309_p3), %s4292_s13, 0 }
  0x81   : > { %2647 = dma.hbm_to_vmem [thread:$0]  (!%p4308_p9), %s3272_s25, 128, %s277_s24, %s3201_s29  }
  0x82   : > { %301 = sbr.rel (%p4309_p3) target bundleno = 1714 (0x6b2), region = 36  ;;  %s2359_s5 = sshll.u32 (!%p4309_p3), %s303_s26, 3 }
  0x83   : > { %s304_s15 = scalar_lea.sflag (!%p4309_p3), [#allocation8], %s303_s26  ;;  %s3297_s20 = scalar_lea.vmem (!%p4309_p3), [#allocation7], %s2359_s5 }
  0x89   : > { %2949 = dma.done.wait (%p4310_p7), %s304_s15, 128  }
  0x8a   : > { %2951 = vsyncadd (%p4310_p7), %s304_s15, 4294967168  ;;  %s312_s8 = sand.u32 1, %s3116_s28   ;;  %s2360_s30 = sshll.u32 %s303_s26, 2 }
  0x8b   : > { %s313_s29 = scalar_lea.sflag [#allocation11], %s312_s8  ;;  %s3304_s25 = scalar_lea.vmem [#allocation10], %s2360_s30 }
  0x8c   : > { %2953 = dma.done.wait (%p4310_p7), %s313_s29, 192  }
  0x8d   : > { %2955 = vsyncadd (%p4310_p7), %s313_s29, 4294967104  ;;  %s367_s7 = sand.u32 1, %s2966_s16   ;;  %s378_s28 = ssub.s32 1, %s2990_s22 }
  0x8e   : > { %s379_s24 = smul.u32 %s2986_s21, %s378_s28  ;;  %p381_p2 = scmp.lt.s32.totalorder %s2994_s23, 1 }
  0x8f   : > { %s3315_s6 = sshll.u32 %s2986_s21, 8  ;;  %p393_p11 = scmp.eq.s32.totalorder %s2990_s22, 0 }
  0x90   : > { %s2362_s11 = sshll.u32 %s379_s24, 1  ;;  %p394_p12 = scmp.eq.s32.totalorder %s2986_s21, 0 }
  0x91   : > { %s382_s13 = scalar_select %p381_p2, %s2994_s23, 1 }
  0x92   : > { %p383_p5 = scmp.lt.s32.totalorder %s2362_s11, 3  ;;  %p395_p10 = pnand %p394_p12, %p393_p11 }
  0x93   : > { %s2363_s14 = sshll.u32 %s382_s13, 2  ;;  %s325_s9 = scalar_lea.vmem [#allocation12], %s2359_s5  ;;  %v399_v0 = vlaneseq (!%p395_p10)  ;;  %vm404_vm0 = vcmask (!%p395_p10), 0   ;;  %v3015_v1 = vmov (!%p395_p10), 0.0  }
  0x94   : > { %s4356_s11 = smov (!%p383_p5, %s2362_s11), 3  ;;  %s3325_s26 = scalar_lea.vmem [#allocation13], %s367_s7  ;;  %405 = vst.msk [vmem:[#allocation4] sm:$0x1] (!%p395_p10), %vm404_vm0, %v3015_v1  ;;  %406 = vst.msk [vmem:[#allocation5] sm:$0x1] (!%p395_p10), %vm404_vm0, %v3015_v1 }
  0x95   : > { %s386_s17 = sadd.s32 %s2363_s14, %s4356_s11  ;;  %398 = sbr.rel (%p395_p10) target bundleno = 156 (0x9c), region = 52  ;;  %407 = vst.msk [vmem:[#allocation6] sm:$0x1] (!%p395_p10), %vm404_vm0, %v3015_v1  ;;  %vm401_vm1 = vcmp.lt.s32.totalorder (!%p395_p10), %v399_v0, 512 }
  0x96   : > { %s387_s12 = scalar_lea.vmem %s4264_s3, %s386_s17  ;;  %403 = vst.msk [vmem:[#allocation3] sm:$0xf] (!%p395_p10), %vm401_vm1, %v3015_v1 }
  0x9c PF: > { %p2365_p8 = scmp.ne.s32.totalorder %s2990_s22, 0 }
  0x9d   : > { %v3328_v2 = vld [vmem:[%s387_s12] sm:$0x3] (!%p2365_p8)  ;;  %v420_v3 = vlaneseq (!%p2365_p8)  ;;  %v639_v4 = vld [vmem:[%s3297_s20] sm:$0xff] (!%p2365_p8)  ;;  %v640_v5 = vld [vmem:[%s325_s9] sm:$0xff] (!%p2365_p8)  ;;  %v3016_v8 = vmov (!%p2365_p8), 1983009808  }
  0x9e   : > { %410 = sbr.rel (%p2365_p8) target bundleno = 384 (0x180), region = 56  ;;  %vm412_vm2 = vcmp.gt.s32.totalorder (!%p2365_p8), %v3328_v2, 0  ;;  %v641_v6 = vsub.f32 (!%p2365_p8), %v639_v4, %v640_v5  ;;  %v418_v9 = vunpack.c.l.s4 (!%p2365_p8), %v3016_v8  ;;  %v3017_v10 = vmov (!%p2365_p8), 0.0   ;;  %v415_v21 = vld [vmem:[%s3304_s25] sm:$0xf] (!%p2365_p8)  ;;  %s600_s5 = sshra.s32 (!%p2365_p8), %s3315_s6, 7 }
  0x9f   : > { %v3333_v7 = vshrl.u32 (!%p2365_p8), %v420_v3, 7  ;;  %v2366_v11 = vsel (!%p2365_p8), %vm412_vm2, 1.0, %v3017_v10  ;;  %vm427_vm4 = vcmask (!%p2365_p8), 1041408   ;;  %vm655_vm5 = vcmask (!%p2365_p8), 1043456   ;;  %s602_s15 = scalar_lea.vmem (!%p2365_p8), [#allocation2], %s600_s5 }
  0xa0   : > { %v642_v12 = vand.u32 (!%p2365_p8), 2147483647, %v641_v6  ;;  %v644_v13 = vmul.f32 (!%p2365_p8), 0.5, %v641_v6  ;;  %v419_v16 = vunpack.c.0.s8 (!%p2365_p8), %v418_v9  ;;  %vm620_vm6 = vcmask (!%p2365_p8), 1040384  }
  0xa1   : > { %v3338_v14 = vsub.s32 (!%p2365_p8), 0, %v3333_v7  ;;  %v3341_v15 = vsub.s32 (!%p2365_p8), 1, %v3333_v7  ;;  %vm605_vm11 = vcmp.lt.s32.totalorder (!%p2365_p8), %v420_v3, 256  ;;  %vm627_vm12 = vcmask (!%p2365_p8), 0  }
  0xa2   : > { %vm643_vm3 = vcmp.lt.f32.partialorder (!%p2365_p8), %v642_v12, 1.0  ;;  %v645_v17 = vmul.f32 (!%p2365_p8), %v644_v13, %v641_v6  ;;  %v2369_v18 = vadd.f32 (!%p2365_p8), -0.5, %v642_v12  ;;  %v422_v23 = vsub.s32 (!%p2365_p8), %v419_v16, %v3333_v7 }
  0xa3   : > { %v3344_v19 = vrot.slane (!%p2365_p8), %v2366_v11, %v3338_v14  ;;  %v3347_v20 = vrot.slane (!%p2365_p8), %v2366_v11, %v3341_v15  ;;  %v492_v44 = vrot.slane (!%p2365_p8), %v3328_v2, %v3338_v14  ;;  %v496_v45 = vrot.slane (!%p2365_p8), %v3328_v2, %v3341_v15  ;;  %v608_v2 = vld [vmem:[#allocation5] sm:$0x1] (!%p2365_p8) }
  0xa4   : > { %v647_v22 = vsel (!%p2365_p8), %vm643_vm3, %v645_v17, %v2369_v18  ;;  %v423_v25 = vrot.slane (!%p2365_p8), %v415_v21, %v422_v23 }
  0xa5   : > { %v649_v24 = vcombine.low %v3344_v19, %v3347_v20  ;;  %v621_v33 = vsel %vm620_vm6, %v3344_v19, 0.0  ;;  %v622_v37 = vsel %vm620_vm6, %v3347_v20, 0.0  ;;  %vm497_vm7 = vcmp.eq.s32.totalorder %v3333_v7, %v492_v44 }
  0xa6   : > { %v424_v27 = vcombine.high %v423_v25, %v423_v25  ;;  %v428_v28 = vsel %vm427_vm4, %v423_v25, -inf  ;;  %v623_v41 = vadd.f32 %v622_v37, %v621_v33  ;;  %vm498_vm8 = vcmp.eq.s32.totalorder %v3333_v7, %v496_v45 }
  0xa7   : > { %v651_v26 = vmul.f32 %v649_v24, %v647_v22  ;;  %v429_v31 = vrot.slane %v428_v28, 4  ;;  %v2367_v52 = vsel %vm497_vm7, 1.0, %v3017_v10  ;;  %v2368_v53 = vsel %vm498_vm8, 1.0, %v3017_v10 }
  0xa8   : > { %v435_v32 = vsel %vm427_vm4, %v424_v27, -inf  ;;  %v505_v55 = vcombine.low %v2367_v52, %v2368_v53  ;;  %v545_v53 = vstv %s3315_s6 }
  0xa9   : > { %v653_v29 = vcombine.high %v651_v26, %v651_v26  ;;  %v656_v30 = vsel %vm655_vm5, %v651_v26, 0.0  ;;  %v430_v35 = vmax.f32 %v428_v28, %v429_v31  ;;  %v436_v36 = vrot.slane %v435_v32, 4 }
  0xaa   : > { %v512_v58 = vrot.slane %v505_v55, %v422_v23 }
  0xab   : > { %v657_v34 = vsel %vm655_vm5, %v653_v29, 0.0  ;;  %v431_v39 = vrot.slane %v430_v35, 2  ;;  %v437_v40 = vmax.f32 %v435_v32, %v436_v36 }
  0xac   : > { %v658_v38 = vadd.f32 %v657_v34, %v656_v30  ;;  %v514_v59 = vmul.f32 %v512_v58, %v415_v21  ;;  %v3018_v34 = vmov 1966171168  }
  0xad   : > { %v432_v42 = vmax.f32 %v430_v35, %v431_v39  ;;  %v438_v43 = vrot.slane %v437_v40, 2  ;;  %v554_v35 = vunpack.c.l.s4 %v3018_v34 }
  0xae   : > { %659 = vadd.xlane.f32.xlu0 %v658_v38  ;;  %v522_v60 = vrot.slane %v514_v59, %v422_v23 }
  0xaf   : > { %v433_v46 = vrot.slane %v432_v42, 1  ;;  %v439_v47 = vmax.f32 %v437_v40, %v438_v43  ;;  %v543_v40 = vand.u32 127, %v420_v3  ;;  %v555_v44 = vunpack.c.0.s8 %v554_v35  ;;  %v629_v3 = vld [vmem:[#allocation6] sm:$0x1] }
  0xb0   : > { %v523_v63 = vcombine.high %v522_v60, %v522_v60  ;;  %v526_v5 = vsel %vm427_vm4, %v522_v60, 0.0 }
  0xb1   : > { %v434_v48 = vmax.f32 %v432_v42, %v433_v46  ;;  %v440_v49 = vrot.slane %v439_v47, 1  ;;  %v527_v11 = vrot.slane %v526_v5, 4 }
  0xb2   : > { %624 = vadd.xlane.f32.xlu0 %v623_v41  ;;  %v533_v10 = vsel %vm427_vm4, %v523_v63, 0.0 }
  0xb3   : > { %v441_v50 = vmax.f32 %v439_v47, %v440_v49  ;;  %v534_v16 = vrot.slane %v533_v10, 4  ;;  %v544_v49 = vadd.s32 128, %v543_v40 }
  0xb5   : > { %v444_v51 = vcombine.low %v434_v48, %v441_v50  ;;  %v535_v24 = vadd.f32 %v534_v16, %v533_v10  ;;  %v547_v58 = vadd.s32 %v545_v53, %v544_v49 }
  0xb7   : > { %v451_v54 = vrot.slane %v444_v51, %v422_v23  ;;  %v536_v29 = vrot.slane %v535_v24, 2  ;;  %v558_v51 = vsub.s32 %v555_v44, %v3333_v7  ;;  %vm549_vm10 = vcmp.lt.s32.totalorder %v547_v58, 384 }
  0xb9   : > { %v453_v56 = vsub.f32 %v415_v21, %v451_v54  ;;  %v528_v21 = vadd.f32 %v527_v11, %v526_v5  ;;  %v537_v31 = vadd.f32 %v536_v29, %v535_v24 }
  0xbb   : > { %v454_v57 = vmul.f32 1.442695, %v453_v56  ;;  %v529_v27 = vrot.slane %v528_v21, 2  ;;  %v538_v33 = vrot.slane %v537_v31, 1 }
  0xbd   : > { %2768 = vpow2.f32 %v454_v57  ;;  %v530_v30 = vadd.f32 %v529_v27, %v528_v21  ;;  %v539_v43 = vadd.f32 %v538_v33, %v537_v31  ;;  %v546_v57 = vadd.s32 %v545_v53, %v543_v40 }
  0xbf   : > { %v531_v32 = vrot.slane %v530_v30, 1  ;;  %vm548_vm9 = vcmp.lt.s32.totalorder %v546_v57, 384 }
  0xc1   : > { %v532_v38 = vadd.f32 %v531_v32, %v530_v30 }
  0xc7   : > { %v2769_v61 = vpop.eup %2768 }
  0xc8   : > { %v463_v62 = vrot.slane %v2769_v61, %v422_v23 }
  0xca   : > { %v464_v0 = vcombine.high %v463_v62, %v463_v62  ;;  %v467_v1 = vsel %vm427_vm4, %v463_v62, 0.0 }
  0xcb   : > { %v468_v4 = vrot.slane %v467_v1, 4 }
  0xcc   : > { %v474_v6 = vsel %vm427_vm4, %v464_v0, 0.0 }
  0xcd   : > { %v469_v8 = vadd.f32 %v468_v4, %v467_v1  ;;  %v475_v9 = vrot.slane %v474_v6, 4 }
  0xcf   : > { %v470_v12 = vrot.slane %v469_v8, 2  ;;  %v476_v13 = vadd.f32 %v475_v9, %v474_v6 }
  0xd1   : > { %v471_v17 = vadd.f32 %v470_v12, %v469_v8  ;;  %v477_v18 = vrot.slane %v476_v13, 2  ;;  %v648_v12 = vld [vmem:[#allocation4] sm:$0x1] }
  0xd3   : > { %v472_v22 = vrot.slane %v471_v17, 1  ;;  %v478_v23 = vadd.f32 %v477_v18, %v476_v13 }
  0xd5   : > { %v473_v25 = vadd.f32 %v472_v22, %v471_v17  ;;  %v479_v26 = vrot.slane %v478_v23, 1 }
  0xd7   : > { %v480_v28 = vadd.f32 %v479_v26, %v478_v23  ;;  %2770 = vlog2.f32 %v473_v25 }
  0xd9   : > { %2772 = vlog2.f32 %v480_v28 }
  0xe1   : > { %v2771_v36 = vpop.eup %2770 }
  0xe2   : > { %v482_v37 = vmul.f32 0.6931472, %v2771_v36 }
  0xe3   : > { %v2773_v39 = vpop.eup %2772 }
  0xe4   : > { %v484_v41 = vmul.f32 0.6931472, %v2773_v39  ;;  %v485_v42 = vadd.f32 %v482_v37, %v434_v48 }
  0xe6   : > { %v486_v45 = vadd.f32 %v484_v41, %v441_v50  ;;  %v540_v46 = vsub.f32 %v485_v42, %v532_v38 }
  0xe8   : > { %v541_v47 = vsub.f32 %v486_v45, %v539_v43  ;;  %v630_v52 = vmul.f32 %v3344_v19, %v540_v46 }
  0xea   : > { %v552_v54 = vcombine.low %v540_v46, %v541_v47  ;;  %v631_v55 = vmul.f32 %v3347_v20, %v541_v47  ;;  %v632_v56 = vsel %vm620_vm6, %v630_v52, 0.0 }
  0xec   : > { %v559_v48 = vrot.slane %v552_v54, %v558_v51  ;;  %v633_v59 = vsel %vm620_vm6, %v631_v55, 0.0 }
  0xed   : > { %v634_v50 = vadd.f32 %v633_v59, %v632_v56 }
  0xee   : > { %v566_v60 = vrot.slane %v559_v48, %v558_v51 }
  0xef   : > { %635 = vadd.xlane.f32.xlu1 %v634_v50 }
  0xf0   : > { %v568_v7 = vsel %vm412_vm2, 0.0, %v566_v60 }
  0xf1   : > { %v573_v19 = vrot.slane %v568_v7, %v3338_v14  ;;  %v577_v20 = vrot.slane %v568_v7, %v3341_v15 }
  0xf3   : > { %v580_v61 = vsel %vm548_vm9, %v573_v19, -inf  ;;  %v581_v62 = vsel %vm549_vm10, %v577_v20, -inf }
  0xf4   : > { %v584_v63 = vcombine.low %v580_v61, %v581_v62 }
  0xf6   : > { %v591_v0 = vrot.slane %v584_v63, %v558_v51 }
  0xf8   : > { %v598_v1 = vrot.slane %v591_v0, %v558_v51 }
  0xfa   : > { %607 = vst.msk [vmem:[%s602_s15] sm:$0x3] %vm605_vm11, %v598_v1 }
 0x13b   : > { %v660_v4 = vpop.xlane.xlu0 %659 }
 0x13c   : > { %v661_v5 = vsel %vm655_vm5, %v660_v4, 0.0 }
 0x13d   : > { %v662_v6 = vrot.slane %v661_v5, 4 }
 0x13f   : > { %v663_v8 = vadd.f32 %v662_v6, %v661_v5  ;;  %v625_v9 = vpop.xlane.xlu0 %624 }
 0x140   : > { %v626_v14 = vadd.f32 %v625_v9, %v608_v2 }
 0x141   : > { %v664_v10 = vrot.slane %v663_v8, 2 }
 0x142   : > { %628 = vst.msk [vmem:[#allocation5] sm:$0x1] %vm627_vm12, %v626_v14 }
 0x143   : > { %v665_v15 = vadd.f32 %v664_v10, %v663_v8 }
 0x145   : > { %v666_v11 = vrot.slane %v665_v15, 1 }
 0x147   : > { %v667_v13 = vadd.f32 %v666_v11, %v665_v15 }
 0x149   : > { %v668_v16 = vadd.f32 %v667_v13, %v648_v12 }
 0x14b   : > { %669 = vst.msk [vmem:[#allocation4] sm:$0x1] %vm627_vm12, %v668_v16 }
 0x17c   : > { %v636_v17 = vpop.xlane.xlu1 %635 }
 0x17d   : > { %v637_v18 = vadd.f32 %v636_v17, %v629_v3 }
 0x17f   : > { %638 = vst.msk [vmem:[#allocation6] sm:$0x1] %vm627_vm12, %v637_v18 }
 0x180 PF: > { %p670_p13 = scmp.eq.s32.totalorder %s2990_s22, 1  ;;  %p2370_p1 = scmp.ne.s32.totalorder %s2990_s22, 1 }
 0x181   : > { %v674_v21 = vlaneseq (!%p2370_p1)  ;;  %s873_s20 = sshra.s32 (!%p2370_p1), %s3315_s6, 7  ;;  %v3019_v22 = vmov (!%p2370_p1), 0   ;;  %v952_v19 = vld [vmem:[#allocation2] sm:$0xf] (!%p2370_p1)  ;;  %v3401_v20 = vstv (!%p2370_p1), %s3315_s6  ;;  %v4311_v11 = vmov (!%p2370_p1), 0 }
 0x182   : > { %673 = sbr.rel (%p2370_p1) target bundleno = 1258 (0x4ea), region = 60  ;;  %2774 = vset.pattern.permute.xlu1 (!%p2370_p1), %v3019_v22  ;;  %s875_s8 = scalar_lea.vmem (!%p2370_p1), [#allocation2], %s873_s20  ;;  %v4313_v13 = vmov (!%p2370_p1), 0 }
 0x183   : > { %v3389_v23 = vshrl.u32 (!%p2370_p1), %v674_v21, 7  ;;  %v876_v24 = vld [vmem:[%s875_s8] sm:$0x3] (!%p2370_p1)  ;;  %v3398_v7 = vand.u32 (!%p2370_p1), 127, %v674_v21 }
 0x185   : > { %v880_v25 = vsub.s32 (!%p2370_p1), 0, %v3389_v23  ;;  %v884_v27 = vsub.s32 (!%p2370_p1), 1, %v3389_v23  ;;  %v1128_v61 = vsub.s32 (!%p2370_p1), 3, %v3389_v23  ;;  %v3409_v63 = vadd.s32 (!%p2370_p1), 128, %v3398_v7 }
 0x186   : > { %v713_v0 = vadd.s32 (!%p2370_p1), %v3401_v20, %v3389_v23  ;;  %v3414_v4 = vadd.s32 (!%p2370_p1), 384, %v3398_v7  ;;  %v1124_v6 = vsub.s32 (!%p2370_p1), 2, %v3389_v23  ;;  %v681_v8 = vadd.s32 (!%p2370_p1), 8, %v3389_v23 }
 0x187   : > { %v881_v26 = vrot.slane (!%p2370_p1), %v876_v24, %v880_v25  ;;  %v885_v28 = vrot.slane (!%p2370_p1), %v876_v24, %v884_v27  ;;  %v3406_v62 = vrot.slane (!%p2370_p1), %v952_v19, %v884_v27  ;;  %v3416_v5 = vrot.slane (!%p2370_p1), %v952_v19, %v1128_v61 }
 0x188   : > { %v3421_v2 = vrot.slane (!%p2370_p1), %v952_v19, %v880_v25  ;;  %vm746_vm13 = vcmp.lt.s32.totalorder (!%p2370_p1), %v713_v0, %v3409_v63  ;;  %vm748_vm15 = vcmp.lt.s32.totalorder (!%p2370_p1), %v713_v0, %v3414_v4  ;;  %v3429_v9 = vadd.s32 (!%p2370_p1), 256, %v3398_v7 }
 0x189   : > { %888 = vxpose.xlu0.b32.start.end [1/1] (short) %v881_v26, 128  ;;  %v3431_v14 = vrot.slane %v952_v19, %v1124_v6  ;;  %v714_v10 = vadd.s32 %v3401_v20, %v681_v8  ;;  %vm745_vm1 = vcmp.lt.s32.totalorder %v713_v0, %v3398_v7  ;;  %v682_v3 = vadd.s32 16, %v3389_v23 }
 0x18a   : > { %vm747_vm9 = vcmp.lt.s32.totalorder %v713_v0, %v3429_v9  ;;  %v3020_v24 = vmov 1.0|1.0   ;;  %v694_v6 = vadd.s32 112, %v3389_v23  ;;  %v695_v8 = vadd.s32 120, %v3389_v23 }
 0x18b   : > { %vm750_vm11 = vcmp.lt.s32.totalorder %v714_v10, %v3409_v63  ;;  %v3479_v25 = vadd.s32 %v3401_v20, %v682_v3  ;;  %v697_v3 = vadd.s32 136, %v3389_v23 }
 0x18d   : > { %v730_v18 = vadd.s32 %v3401_v20, %v697_v3 }
 0x1c6   : > { %920 = vxpose.xlu0.b32.start.end [1/1] (short) %v885_v28, 128 }
 0x1ef   : > { %2775 = vset.pattern.permute.xlu0 %v3019_v22  ;;  %v683_v22 = vadd.s32 24, %v3389_v23 }
 0x1f1   : > { %v716_v27 = vadd.s32 %v3401_v20, %v683_v22 }
 0x209   : > { %v904_v29 = vpop.trf.xlu0 }
 0x20a   : > { %955 = vperm.xlu1 %2774, %v904_v29  }
 0x20d   : > { %v905_v30 = vpop.trf.xlu0 }
 0x211   : > { %v906_v31 = vpop.trf.xlu0 }
 0x215   : > { %v907_v32 = vpop.trf.xlu0 }
 0x219   : > { %v908_v33 = vpop.trf.xlu0 }
 0x21d   : > { %v909_v34 = vpop.trf.xlu0 }
 0x221   : > { %v910_v35 = vpop.trf.xlu0 }
 0x225   : > { %v911_v36 = vpop.trf.xlu0 }
 0x229   : > { %v912_v37 = vpop.trf.xlu0 }
 0x22d   : > { %v913_v38 = vpop.trf.xlu0 }
 0x231   : > { %v914_v39 = vpop.trf.xlu0 }
 0x235   : > { %v915_v40 = vpop.trf.xlu0 }
 0x239   : > { %v916_v41 = vpop.trf.xlu0 }
 0x23d   : > { %v917_v42 = vpop.trf.xlu0 }
 0x241   : > { %v918_v43 = vpop.trf.xlu0 }
 0x245   : > { %v919_v44 = vpop.trf.xlu0 }
 0x249   : > { %v936_v45 = vpop.trf.xlu0 }
 0x24a   : > { %1035 = vperm.xlu1 %2774, %v936_v45  }
 0x24d   : > { %v937_v46 = vpop.trf.xlu0 }
 0x24e   : > { %960 = vperm.xlu1 %2774, %v905_v30   ;;  %1040 = vperm.xlu0 %2775, %v937_v46  }
 0x251   : > { %v938_v47 = vpop.trf.xlu0 }
 0x252   : > { %965 = vperm.xlu1 %2774, %v906_v31   ;;  %v684_v31 = vadd.s32 32, %v3389_v23 }
 0x255   : > { %v939_v49 = vpop.trf.xlu0 }
 0x256   : > { %1045 = vperm.xlu1 %2774, %v938_v47   ;;  %v688_v47 = vadd.s32 64, %v3389_v23 }
 0x259   : > { %v940_v51 = vpop.trf.xlu0 }
 0x25a   : > { %970 = vperm.xlu1 %2774, %v907_v32  }
 0x25d   : > { %v941_v52 = vpop.trf.xlu0 }
 0x25e   : > { %1050 = vperm.xlu1 %2774, %v939_v49   ;;  %v689_v49 = vadd.s32 72, %v3389_v23 }
 0x261   : > { %v942_v53 = vpop.trf.xlu0 }
 0x262   : > { %975 = vperm.xlu1 %2774, %v908_v33   ;;  %v685_v33 = vadd.s32 40, %v3389_v23 }
 0x265   : > { %v943_v54 = vpop.trf.xlu0 }
 0x266   : > { %1055 = vperm.xlu1 %2774, %v940_v51   ;;  %v721_v51 = vadd.s32 %v3401_v20, %v688_v47 }
 0x269   : > { %v944_v55 = vpop.trf.xlu0 }
 0x26a   : > { %980 = vperm.xlu1 %2774, %v909_v34   ;;  %v717_v34 = vadd.s32 %v3401_v20, %v684_v31  ;;  %v701_v31 = vadd.s32 168, %v3389_v23 }
 0x26d   : > { %v945_v56 = vpop.trf.xlu0 }
 0x26e   : > { %1060 = vperm.xlu1 %2774, %v941_v52   ;;  %v722_v52 = vadd.s32 %v3401_v20, %v689_v49 }
 0x271   : > { %v946_v57 = vpop.trf.xlu0 }
 0x272   : > { %985 = vperm.xlu1 %2774, %v910_v35  }
 0x275   : > { %v947_v58 = vpop.trf.xlu0 }
 0x276   : > { %1065 = vperm.xlu1 %2774, %v942_v53  }
 0x279   : > { %v948_v48 = vpop.trf.xlu0 }
 0x27a   : > { %990 = vperm.xlu1 %2774, %v911_v36   ;;  %v718_v36 = vadd.s32 %v3401_v20, %v685_v33 }
 0x27d   : > { %v949_v59 = vpop.trf.xlu0 }
 0x27e   : > { %1070 = vperm.xlu1 %2774, %v943_v54  }
 0x281   : > { %v950_v50 = vpop.trf.xlu0 }
 0x282   : > { %995 = vperm.xlu1 %2774, %v912_v37  }
 0x285   : > { %v951_v60 = vpop.trf.xlu0 }
 0x286   : > { %1000 = vperm.xlu1 %2774, %v913_v38  }
 0x289   : > { %v956_v1 = vpop.permute.xlu1 %955 }
 0x28a   : > { %1005 = vperm.xlu1 %2774, %v914_v39   ;;  %vm1263_vm14 = vcmp.eq.f32.partialorder %v956_v1, %v3406_v62  ;;  %vm1265_vm0 = vcmp.eq.f32.partialorder %v956_v1, %v3416_v5  ;;  %vm1262_vm2 = vcmp.eq.f32.partialorder %v956_v1, %v3421_v2  ;;  %vm1135_vm3 = vcmp.gt.f32.partialorder %v956_v1, %v3406_v62 }
 0x28b   : > { %vm1391_vm4 = vmand %vm1263_vm14, %vm746_vm13  ;;  %vm1137_vm5 = vcmp.gt.f32.partialorder %v956_v1, %v3416_v5  ;;  %vm1134_vm7 = vcmp.gt.f32.partialorder %v956_v1, %v3421_v2  ;;  %vm1264_vm10 = vcmp.eq.f32.partialorder %v956_v1, %v3431_v14 }
 0x28c   : > { %vm1393_vm6 = vmand %vm1265_vm0, %vm748_vm15 }
 0x28d   : > { %vm1390_vm8 = vmand %vm1262_vm2, %vm745_vm1  ;;  %vm1136_vm1 = vcmp.gt.f32.partialorder %v956_v1, %v3431_v14 }
 0x28e   : > { %1010 = vperm.xlu1 %2774, %v915_v40   ;;  %vm3444_vm12 = vmor %vm1135_vm3, %vm1391_vm4  ;;  %vm752_vm4 = vcmp.lt.s32.totalorder %v714_v10, %v3414_v4  ;;  %v686_v40 = vadd.s32 48, %v3389_v23 }
 0x28f   : > { %v4312_v11 = vsel %vm3444_vm12, 4294967295, %v4311_v11  ;;  %vm3448_vm13 = vmor %vm1137_vm5, %vm1393_vm6 }
 0x290   : > { %v4314_v13 = vsel %vm3448_vm13, 4294967295, %v4313_v13  ;;  %vm3454_vm0 = vmor %vm1134_vm7, %vm1390_vm8  ;;  %vm4317_vm7 = vnez %v4312_v11  ;;  %v728_v11 = vadd.s32 %v3401_v20, %v695_v8 }
 0x291   : > { %vm1392_vm2 = vmand %vm1264_vm10, %vm747_vm9  ;;  %vm749_vm10 = vcmp.lt.s32.totalorder %v714_v10, %v3398_v7 }
 0x292   : > { %1015 = vperm.xlu1 %2774, %v916_v41   ;;  %vm3467_vm13 = vmor %vm1136_vm1, %vm1392_vm2  ;;  %vm751_vm2 = vcmp.lt.s32.totalorder %v714_v10, %v3429_v9  ;;  %v687_v41 = vadd.s32 56, %v3389_v23  ;;  %v3764_v10 = vadd.s32 %v3401_v20, %v694_v6 }
 0x296   : > { %1020 = vperm.xlu1 %2774, %v917_v42   ;;  %v719_v42 = vadd.s32 %v3401_v20, %v686_v40  ;;  %v705_v40 = vadd.s32 200, %v3389_v23 }
 0x29a   : > { %1025 = vperm.xlu1 %2774, %v918_v43   ;;  %v720_v43 = vadd.s32 %v3401_v20, %v687_v41 }
 0x29e   : > { %1030 = vperm.xlu1 %2774, %v919_v44  }
 0x2a2   : > { %1075 = vperm.xlu1 %2774, %v944_v55   ;;  %v690_v55 = vadd.s32 80, %v3389_v23 }
 0x2a6   : > { %1080 = vperm.xlu1 %2774, %v945_v56   ;;  %v691_v56 = vadd.s32 88, %v3389_v23 }
 0x2aa   : > { %1085 = vperm.xlu1 %2774, %v946_v57   ;;  %v723_v57 = vadd.s32 %v3401_v20, %v690_v55 }
 0x2ae   : > { %1090 = vperm.xlu1 %2774, %v947_v58   ;;  %v724_v58 = vadd.s32 %v3401_v20, %v691_v56 }
 0x2b2   : > { %1095 = vperm.xlu1 %2774, %v948_v48  }
 0x2b6   : > { %1100 = vperm.xlu1 %2774, %v949_v59  }
 0x2ba   : > { %1105 = vperm.xlu1 %2774, %v950_v50   ;;  %v692_v50 = vadd.s32 96, %v3389_v23 }
 0x2bc   : > { %v725_v19 = vadd.s32 %v3401_v20, %v692_v50 }
 0x2be   : > { %1110 = vperm.xlu1 %2774, %v951_v60   ;;  %v693_v60 = vadd.s32 104, %v3389_v23 }
 0x2c0   : > { %v726_v61 = vadd.s32 %v3401_v20, %v693_v60 }
 0x2c9   : > { %v3436_v15 = vpop.permute.xlu1 %1035 }
 0x2cd   : > { %v961_v12 = vpop.permute.xlu1 %960  ;;  %v1041_v22 = vpop.permute.xlu0 %1040 }
 0x2ce   : > { %vm1139_vm14 = vcmp.gt.f32.partialorder %v961_v12, %v3406_v62  ;;  %vm1267_vm15 = vcmp.eq.f32.partialorder %v961_v12, %v3406_v62  ;;  %vm1269_vm12 = vcmp.eq.f32.partialorder %v961_v12, %v3416_v5  ;;  %vm1141_vm6 = vcmp.gt.f32.partialorder %v961_v12, %v3416_v5 }
 0x2cf   : > { %vm1395_vm3 = vmand %vm1267_vm15, %vm750_vm11  ;;  %vm1266_vm11 = vcmp.eq.f32.partialorder %v961_v12, %v3421_v2  ;;  %vm1138_vm15 = vcmp.gt.f32.partialorder %v961_v12, %v3421_v2 }
 0x2d0   : > { %vm1523_vm5 = vmor %vm1139_vm14, %vm1395_vm3  ;;  %vm4320_vm3 = vnez %v4314_v13  ;;  %v696_v13 = vadd.s32 128, %v3389_v23 }
 0x2d1   : > { %v3463_v17 = vpop.permute.xlu1 %965  ;;  %vm2499_vm8 = vmpackc.low %vm1523_vm5, %vm4317_vm7 }
 0x2d2   : > { %2500 = vmatprep.subr.msk.bf16.mxu0 %vm2499_vm8, %v3020_v24  ;;  %vm1397_vm9 = vmand %vm1269_vm12, %vm752_vm4  ;;  %vm1268_vm12 = vcmp.eq.f32.partialorder %v961_v12, %v3431_v14  ;;  %v3789_v16 = vadd.s32 %v3401_v20, %v696_v13 }
 0x2d3   : > { %vm1525_vm14 = vmor %vm1141_vm6, %vm1397_vm9  ;;  %vm1140_vm6 = vcmp.gt.f32.partialorder %v961_v12, %v3431_v14  ;;  %vm754_vm9 = vcmp.lt.s32.totalorder %v3479_v25, %v3409_v63 }
 0x2d4   : > { %vm2563_vm5 = vmpackc.low %vm1525_vm14, %vm4320_vm3  ;;  %vm758_vm14 = vcmp.lt.s32.totalorder %v716_v27, %v3409_v63  ;;  %vm1143_vm3 = vcmp.gt.f32.partialorder %v3463_v17, %v3406_v62 }
 0x2d5   : > { %2564 = vmatprep.subr.msk.bf16.mxu1 %vm2563_vm5, %v3020_v24  ;;  %vm1394_vm1 = vmand %vm1266_vm11, %vm749_vm10  ;;  %v3484_v26 = vpop.permute.xlu1 %1045  ;;  %vm1271_vm10 = vcmp.eq.f32.partialorder %v3463_v17, %v3406_v62 }
 0x2d6   : > { %vm1522_vm4 = vmor %vm1138_vm15, %vm1394_vm1 }
 0x2d7   : > { %vm2501_vm7 = vmpackc.low %vm1522_vm4, %vm3454_vm0  ;;  %vm756_vm4 = vcmp.lt.s32.totalorder %v3479_v25, %v3414_v4 }
 0x2d8   : > { %2502 = vmatpush1.bf16.msk.msra.mxu0 %vm2501_vm7, %v3020_v24  ;;  %vm1396_vm8 = vmand %vm1268_vm12, %vm751_vm2  ;;  %vm760_vm7 = vcmp.lt.s32.totalorder %v716_v27, %v3414_v4 }
 0x2d9   : > { %vm1524_vm11 = vmor %vm1140_vm6, %vm1396_vm8  ;;  %v971_v28 = vpop.permute.xlu1 %970 }
 0x2da   : > { %vm2565_vm15 = vmpackc.low %vm1524_vm11, %vm3467_vm13  ;;  %vm1275_vm0 = vcmp.eq.f32.partialorder %v971_v28, %v3406_v62  ;;  %vm1147_vm5 = vcmp.gt.f32.partialorder %v971_v28, %v3406_v62  ;;  %vm1273_vm13 = vcmp.eq.f32.partialorder %v3463_v17, %v3416_v5  ;;  %vm1277_vm8 = vcmp.eq.f32.partialorder %v971_v28, %v3416_v5 }
 0x2db   : > { %2566 = vmatpush1.bf16.msk.msra.mxu1 %vm2565_vm15, %v3020_v24  ;;  %vm1399_vm1 = vmand %vm1271_vm10, %vm754_vm9  ;;  %vm1145_vm15 = vcmp.gt.f32.partialorder %v3463_v17, %v3416_v5  ;;  %vm1149_vm9 = vcmp.gt.f32.partialorder %v971_v28, %v3416_v5 }
 0x2dc   : > { %vm1403_vm2 = vmand %vm1275_vm0, %vm758_vm14  ;;  %vm753_vm0 = vcmp.lt.s32.totalorder %v3479_v25, %v3398_v7 }
 0x2dd   : > { %v3503_v29 = vpop.permute.xlu1 %1050  ;;  %vm1527_vm12 = vmor %vm1143_vm3, %vm1399_vm1 }
 0x2de   : > { %vm1531_vm6 = vmor %vm1147_vm5, %vm1403_vm2  ;;  %vm1270_vm5 = vcmp.eq.f32.partialorder %v3463_v17, %v3421_v2  ;;  %vm757_vm2 = vcmp.lt.s32.totalorder %v716_v27, %v3398_v7 }
 0x2df   : > { %vm2503_vm11 = vmpackc.low %vm1531_vm6, %vm1527_vm12  ;;  %vm1274_vm12 = vcmp.eq.f32.partialorder %v971_v28, %v3421_v2 }
 0x2e0   : > { %2504 = vmatprep.subr.msk.bf16.mxu0 %vm2503_vm11, %v3020_v24  ;;  %vm1401_vm10 = vmand %vm1273_vm13, %vm756_vm4  ;;  %vm1142_vm11 = vcmp.gt.f32.partialorder %v3463_v17, %v3421_v2  ;;  %vm1146_vm4 = vcmp.gt.f32.partialorder %v971_v28, %v3421_v2 }
 0x2e1   : > { %vm1405_vm14 = vmand %vm1277_vm8, %vm760_vm7  ;;  %v3515_v30 = vpop.permute.xlu1 %975 }
 0x2e2   : > { %vm1529_vm3 = vmor %vm1145_vm15, %vm1401_vm10  ;;  %vm755_vm15 = vcmp.lt.s32.totalorder %v3479_v25, %v3429_v9  ;;  %v698_v25 = vadd.s32 144, %v3389_v23 }
 0x2e3   : > { %vm1533_vm1 = vmor %vm1149_vm9, %vm1405_vm14  ;;  %vm1272_vm9 = vcmp.eq.f32.partialorder %v3463_v17, %v3431_v14  ;;  %vm759_vm14 = vcmp.lt.s32.totalorder %v716_v27, %v3429_v9  ;;  %v699_v27 = vadd.s32 152, %v3389_v23 }
 0x2e4   : > { %vm2567_vm6 = vmpackc.low %vm1533_vm1, %vm1529_vm3  ;;  %vm1276_vm3 = vcmp.eq.f32.partialorder %v971_v28, %v3431_v14  ;;  %vm1148_vm1 = vcmp.gt.f32.partialorder %v971_v28, %v3431_v14  ;;  %v731_v28 = vadd.s32 %v3401_v20, %v698_v25 }
 0x2e5   : > { %2568 = vmatprep.subr.msk.bf16.mxu1 %vm2567_vm6, %v3020_v24  ;;  %vm1398_vm13 = vmand %vm1270_vm5, %vm753_vm0  ;;  %v3528_v32 = vpop.permute.xlu1 %1055  ;;  %vm1144_vm5 = vcmp.gt.f32.partialorder %v3463_v17, %v3431_v14  ;;  %v4321_v17 = vmov 0 }
 0x2e6   : > { %vm1402_vm7 = vmand %vm1274_vm12, %vm757_vm2 }
 0x2e7   : > { %vm1526_vm8 = vmor %vm1142_vm11, %vm1398_vm13  ;;  %vm762_vm11 = vcmp.lt.s32.totalorder %v717_v34, %v3409_v63 }
 0x2e8   : > { %vm1530_vm10 = vmor %vm1146_vm4, %vm1402_vm7  ;;  %vm1279_vm4 = vcmp.eq.f32.partialorder %v3515_v30, %v3406_v62  ;;  %vm766_vm7 = vcmp.lt.s32.totalorder %v718_v36, %v3409_v63 }
 0x2e9   : > { %vm2505_vm0 = vmpackc.low %vm1530_vm10, %vm1526_vm8  ;;  %v3540_v35 = vpop.permute.xlu1 %980 }
 0x2ea   : > { %2506 = vmatpush1.bf16.msk.msra.mxu0 %vm2505_vm0, %v3020_v24  ;;  %vm1400_vm2 = vmand %vm1272_vm9, %vm755_vm15  ;;  %vm1283_vm8 = vcmp.eq.f32.partialorder %v3540_v35, %v3406_v62  ;;  %vm1151_vm0 = vcmp.gt.f32.partialorder %v3515_v30, %v3406_v62  ;;  %vm1155_vm15 = vcmp.gt.f32.partialorder %v3540_v35, %v3406_v62 }
 0x2eb   : > { %vm1404_vm12 = vmand %vm1276_vm3, %vm759_vm14 }
 0x2ec   : > { %vm1528_vm6 = vmor %vm1144_vm5, %vm1400_vm2  ;;  %vm764_vm5 = vcmp.lt.s32.totalorder %v717_v34, %v3414_v4 }
 0x2ed   : > { %vm1532_vm13 = vmor %vm1148_vm1, %vm1404_vm12  ;;  %v3548_v37 = vpop.permute.xlu1 %1060  ;;  %vm1281_vm1 = vcmp.eq.f32.partialorder %v3515_v30, %v3416_v5  ;;  %vm768_vm12 = vcmp.lt.s32.totalorder %v718_v36, %v3414_v4 }
 0x2ee   : > { %vm2569_vm10 = vmpackc.low %vm1532_vm13, %vm1528_vm6  ;;  %vm1285_vm6 = vcmp.eq.f32.partialorder %v3540_v35, %v3416_v5 }
 0x2ef   : > { %2570 = vmatpush1.bf16.msk.msra.mxu1 %vm2569_vm10, %v3020_v24  ;;  %vm1407_vm9 = vmand %vm1279_vm4, %vm762_vm11  ;;  %vm1153_vm10 = vcmp.gt.f32.partialorder %v3515_v30, %v3416_v5  ;;  %vm1157_vm11 = vcmp.gt.f32.partialorder %v3540_v35, %v3416_v5 }
 0x2f0   : > { %vm1411_vm14 = vmand %vm1283_vm8, %vm766_vm7 }
 0x2f1   : > { %vm1535_vm3 = vmor %vm1151_vm0, %vm1407_vm9  ;;  %v3564_v38 = vpop.permute.xlu1 %985  ;;  %vm761_vm0 = vcmp.lt.s32.totalorder %v717_v34, %v3398_v7 }
 0x2f2   : > { %vm1539_vm2 = vmor %vm1155_vm15, %vm1411_vm14  ;;  %vm1278_vm15 = vcmp.eq.f32.partialorder %v3515_v30, %v3421_v2  ;;  %vm765_vm14 = vcmp.lt.s32.totalorder %v718_v36, %v3398_v7 }
 0x2f3   : > { %vm2507_vm13 = vmpackc.low %vm1539_vm2, %vm1535_vm3  ;;  %vm1282_vm3 = vcmp.eq.f32.partialorder %v3540_v35, %v3421_v2 }
 0x2f4   : > { %2508 = vmatprep.subr.msk.bf16.mxu0 %vm2507_vm13, %v3020_v24  ;;  %vm1409_vm4 = vmand %vm1281_vm1, %vm764_vm5  ;;  %vm1150_vm13 = vcmp.gt.f32.partialorder %v3515_v30, %v3421_v2  ;;  %vm1154_vm5 = vcmp.gt.f32.partialorder %v3540_v35, %v3421_v2 }
 0x2f5   : > { %vm1413_vm7 = vmand %vm1285_vm6, %vm768_vm12  ;;  %v3579_v39 = vpop.permute.xlu1 %1065 }
 0x2f6   : > { %vm1537_vm8 = vmor %vm1153_vm10, %vm1409_vm4  ;;  %vm763_vm10 = vcmp.lt.s32.totalorder %v717_v34, %v3429_v9  ;;  %v3021_v34 = vmov 1065369472  }
 0x2f7   : > { %vm1541_vm9 = vmor %vm1157_vm11, %vm1413_vm7  ;;  %vm1280_vm11 = vcmp.eq.f32.partialorder %v3515_v30, %v3431_v14  ;;  %vm767_vm7 = vcmp.lt.s32.totalorder %v718_v36, %v3429_v9  ;;  %1998 = vmatprep.mubr.bf16.mxu0 %v3021_v34  ;;  %2039 = vmatprep.mubr.bf16.mxu1 %v3021_v34 }
 0x2f8   : > { %vm2571_vm2 = vmpackc.low %vm1541_vm9, %vm1537_vm8  ;;  %vm1284_vm8 = vcmp.eq.f32.partialorder %v3540_v35, %v3431_v14 }
 0x2f9   : > { %2572 = vmatprep.subr.msk.bf16.mxu1 %vm2571_vm2, %v3020_v24  ;;  %vm1406_vm1 = vmand %vm1278_vm15, %vm761_vm0  ;;  %vm1152_vm0 = vcmp.gt.f32.partialorder %v3515_v30, %v3431_v14  ;;  %vm1156_vm15 = vcmp.gt.f32.partialorder %v3540_v35, %v3431_v14  ;;  %v991_v44 = vpop.permute.xlu1 %990  ;;  %v732_v30 = vadd.s32 %v3401_v20, %v699_v27  ;;  %v734_v35 = vadd.s32 %v3401_v20, %v701_v31 }
 0x2fa   : > { %vm1410_vm12 = vmand %vm1282_vm3, %vm765_vm14 }
 0x2fb   : > { %vm1534_vm6 = vmor %vm1150_vm13, %vm1406_vm1  ;;  %vm770_vm13 = vcmp.lt.s32.totalorder %v719_v42, %v3409_v63 }
 0x2fc   : > { %vm1538_vm4 = vmor %vm1154_vm5, %vm1410_vm12  ;;  %vm1287_vm5 = vcmp.eq.f32.partialorder %v3564_v38, %v3406_v62  ;;  %vm774_vm12 = vcmp.lt.s32.totalorder %v720_v43, %v3409_v63 }
 0x2fd   : > { %vm2509_vm9 = vmpackc.low %vm1538_vm4, %vm1534_vm6  ;;  %vm1291_vm6 = vcmp.eq.f32.partialorder %v991_v44, %v3406_v62  ;;  %v3611_v45 = vpop.permute.xlu1 %1070 }
 0x2fe   : > { %2510 = vmatpush1.bf16.msk.msra.mxu0 %vm2509_vm9, %v3020_v24  ;;  %vm1408_vm14 = vmand %vm1280_vm11, %vm763_vm10  ;;  %vm1159_vm9 = vcmp.gt.f32.partialorder %v3564_v38, %v3406_v62  ;;  %vm1163_vm10 = vcmp.gt.f32.partialorder %v991_v44, %v3406_v62 }
 0x2ff   : > { %vm1412_vm3 = vmand %vm1284_vm8, %vm767_vm7 }
 0x300   : > { %vm1536_vm2 = vmor %vm1152_vm0, %vm1408_vm14  ;;  %vm772_vm0 = vcmp.lt.s32.totalorder %v719_v42, %v3414_v4 }
 0x301   : > { %vm1540_vm1 = vmor %vm1156_vm15, %vm1412_vm3  ;;  %vm1289_vm15 = vcmp.eq.f32.partialorder %v3564_v38, %v3416_v5  ;;  %vm776_vm3 = vcmp.lt.s32.totalorder %v720_v43, %v3414_v4  ;;  %v3626_v46 = vpop.permute.xlu1 %995 }
 0x302   : > { %vm2573_vm4 = vmpackc.low %vm1540_vm1, %vm1536_vm2  ;;  %vm1293_vm2 = vcmp.eq.f32.partialorder %v991_v44, %v3416_v5 }
 0x303   : > { %2574 = vmatpush1.bf16.msk.msra.mxu1 %vm2573_vm4, %v3020_v24  ;;  %vm1415_vm11 = vmand %vm1287_vm5, %vm770_vm13  ;;  %vm1161_vm4 = vcmp.gt.f32.partialorder %v3564_v38, %v3416_v5  ;;  %vm1165_vm13 = vcmp.gt.f32.partialorder %v991_v44, %v3416_v5 }
 0x304   : > { %vm1419_vm7 = vmand %vm1291_vm6, %vm774_vm12 }
 0x305   : > { %vm1543_vm8 = vmor %vm1159_vm9, %vm1415_vm11  ;;  %vm769_vm9 = vcmp.lt.s32.totalorder %v719_v42, %v3398_v7  ;;  %v1001_v53 = vpop.permute.xlu1 %1000 }
 0x306   : > { %vm1547_vm14 = vmor %vm1163_vm10, %vm1419_vm7  ;;  %vm1286_vm10 = vcmp.eq.f32.partialorder %v3564_v38, %v3421_v2  ;;  %vm773_vm7 = vcmp.lt.s32.totalorder %v720_v43, %v3398_v7 }
 0x307   : > { %vm2511_vm1 = vmpackc.low %vm1547_vm14, %vm1543_vm8  ;;  %vm1290_vm8 = vcmp.eq.f32.partialorder %v991_v44, %v3421_v2 }
 0x308   : > { %2512 = vmatprep.subr.msk.bf16.mxu0 %vm2511_vm1, %v3020_v24  ;;  %vm1417_vm5 = vmand %vm1289_vm15, %vm772_vm0  ;;  %vm1158_vm1 = vcmp.gt.f32.partialorder %v3564_v38, %v3421_v2  ;;  %vm1162_vm0 = vcmp.gt.f32.partialorder %v991_v44, %v3421_v2 }
 0x309   : > { %vm1421_vm12 = vmand %vm1293_vm2, %vm776_vm3  ;;  %v3666_v54 = vpop.permute.xlu1 %1005 }
 0x30a   : > { %vm1545_vm6 = vmor %vm1161_vm4, %vm1417_vm5  ;;  %vm771_vm4 = vcmp.lt.s32.totalorder %v719_v42, %v3429_v9  ;;  %v738_v42 = vadd.s32 %v3401_v20, %v705_v40 }
 0x30b   : > { %vm1549_vm11 = vmor %vm1165_vm13, %vm1421_vm12  ;;  %vm1288_vm13 = vcmp.eq.f32.partialorder %v3564_v38, %v3431_v14  ;;  %vm775_vm12 = vcmp.lt.s32.totalorder %v720_v43, %v3429_v9 }
 0x30c   : > { %vm2575_vm14 = vmpackc.low %vm1549_vm11, %vm1545_vm6  ;;  %vm1292_vm6 = vcmp.eq.f32.partialorder %v991_v44, %v3431_v14 }
 0x30d   : > { %2576 = vmatprep.subr.msk.bf16.mxu1 %vm2575_vm14, %v3020_v24  ;;  %vm1414_vm15 = vmand %vm1286_vm10, %vm769_vm9  ;;  %vm1160_vm9 = vcmp.gt.f32.partialorder %v3564_v38, %v3431_v14  ;;  %vm1164_vm10 = vcmp.gt.f32.partialorder %v991_v44, %v3431_v14  ;;  %v1011_v48 = vpop.permute.xlu1 %1010  ;;  %v706_v44 = vadd.s32 208, %v3389_v23 }
 0x30e   : > { %vm1418_vm3 = vmand %vm1290_vm8, %vm773_vm7 }
 0x30f   : > { %vm1542_vm2 = vmor %vm1158_vm1, %vm1414_vm15  ;;  %vm778_vm1 = vcmp.lt.s32.totalorder %v721_v51, %v3409_v63 }
 0x310   : > { %vm1546_vm5 = vmor %vm1162_vm0, %vm1418_vm3  ;;  %vm1295_vm0 = vcmp.eq.f32.partialorder %v3626_v46, %v3406_v62  ;;  %vm782_vm3 = vcmp.lt.s32.totalorder %v722_v52, %v3409_v63 }
 0x311   : > { %vm2513_vm11 = vmpackc.low %vm1546_vm5, %vm1542_vm2  ;;  %vm1299_vm2 = vcmp.eq.f32.partialorder %v1001_v53, %v3406_v62  ;;  %v3708_v59 = vpop.permute.xlu1 %1015 }
 0x312   : > { %2514 = vmatpush1.bf16.msk.msra.mxu0 %vm2513_vm11, %v3020_v24  ;;  %vm1416_vm7 = vmand %vm1288_vm13, %vm771_vm4  ;;  %vm1167_vm11 = vcmp.gt.f32.partialorder %v3626_v46, %v3406_v62  ;;  %vm1171_vm4 = vcmp.gt.f32.partialorder %v1001_v53, %v3406_v62 }
 0x313   : > { %vm1420_vm8 = vmand %vm1292_vm6, %vm775_vm12 }
 0x314   : > { %vm1544_vm14 = vmor %vm1160_vm9, %vm1416_vm7  ;;  %vm780_vm9 = vcmp.lt.s32.totalorder %v721_v51, %v3414_v4 }
 0x315   : > { %vm1548_vm15 = vmor %vm1164_vm10, %vm1420_vm8  ;;  %vm1297_vm10 = vcmp.eq.f32.partialorder %v3626_v46, %v3416_v5  ;;  %vm784_vm8 = vcmp.lt.s32.totalorder %v722_v52, %v3414_v4  ;;  %v1021_v0 = vpop.permute.xlu1 %1020 }
 0x316   : > { %vm2577_vm5 = vmpackc.low %vm1548_vm15, %vm1544_vm14  ;;  %vm1301_vm14 = vcmp.eq.f32.partialorder %v1001_v53, %v3416_v5 }
 0x317   : > { %2578 = vmatpush1.bf16.msk.msra.mxu1 %vm2577_vm5, %v3020_v24  ;;  %vm1423_vm13 = vmand %vm1295_vm0, %vm778_vm1  ;;  %vm1169_vm5 = vcmp.gt.f32.partialorder %v3626_v46, %v3416_v5  ;;  %vm1173_vm1 = vcmp.gt.f32.partialorder %v1001_v53, %v3416_v5 }
 0x318   : > { %vm1427_vm12 = vmand %vm1299_vm2, %vm782_vm3 }
 0x319   : > { %vm1551_vm6 = vmor %vm1167_vm11, %vm1423_vm13  ;;  %vm777_vm11 = vcmp.lt.s32.totalorder %v721_v51, %v3398_v7  ;;  %v3750_v1 = vpop.permute.xlu1 %1025 }
 0x31a   : > { %vm1555_vm7 = vmor %vm1171_vm4, %vm1427_vm12  ;;  %vm1294_vm4 = vcmp.eq.f32.partialorder %v3626_v46, %v3421_v2  ;;  %vm781_vm12 = vcmp.lt.s32.totalorder %v722_v52, %v3398_v7 }
 0x31b   : > { %vm2515_vm15 = vmpackc.low %vm1555_vm7, %vm1551_vm6  ;;  %vm1298_vm6 = vcmp.eq.f32.partialorder %v1001_v53, %v3421_v2 }
 0x31c   : > { %2516 = vmatprep.subr.msk.bf16.mxu0 %vm2515_vm15, %v3020_v24  ;;  %vm1425_vm0 = vmand %vm1297_vm10, %vm780_vm9  ;;  %vm1166_vm15 = vcmp.gt.f32.partialorder %v3626_v46, %v3421_v2  ;;  %vm1170_vm9 = vcmp.gt.f32.partialorder %v1001_v53, %v3421_v2 }
 0x31d   : > { %vm1429_vm3 = vmand %vm1301_vm14, %vm784_vm8  ;;  %v1031_v12 = vpop.permute.xlu1 %1030 }
 0x31e   : > { %vm1553_vm2 = vmor %vm1169_vm5, %vm1425_vm0  ;;  %vm779_vm5 = vcmp.lt.s32.totalorder %v721_v51, %v3429_v9 }
 0x31f   : > { %vm1557_vm13 = vmor %vm1173_vm1, %vm1429_vm3  ;;  %vm1296_vm1 = vcmp.eq.f32.partialorder %v3626_v46, %v3431_v14  ;;  %vm783_vm3 = vcmp.lt.s32.totalorder %v722_v52, %v3429_v9  ;;  %v708_v52 = vadd.s32 224, %v3389_v23 }
 0x320   : > { %vm2579_vm7 = vmpackc.low %vm1557_vm13, %vm1553_vm2  ;;  %vm1300_vm2 = vcmp.eq.f32.partialorder %v1001_v53, %v3431_v14 }
 0x321   : > { %2580 = vmatprep.subr.msk.bf16.mxu1 %vm2579_vm7, %v3020_v24  ;;  %vm1422_vm10 = vmand %vm1294_vm4, %vm777_vm11  ;;  %vm1168_vm11 = vcmp.gt.f32.partialorder %v3626_v46, %v3431_v14  ;;  %vm1172_vm4 = vcmp.gt.f32.partialorder %v1001_v53, %v3431_v14  ;;  %v739_v46 = vadd.s32 %v3401_v20, %v706_v44  ;;  %v709_v53 = vadd.s32 232, %v3389_v23 }
 0x322   : > { %vm1426_vm8 = vmand %vm1298_vm6, %vm781_vm12 }
 0x323   : > { %vm1550_vm14 = vmor %vm1166_vm15, %vm1422_vm10  ;;  %vm786_vm15 = vcmp.lt.s32.totalorder %v723_v57, %v3409_v63  ;;  %v742_v55 = vadd.s32 %v3401_v20, %v709_v53 }
 0x324   : > { %vm1554_vm0 = vmor %vm1170_vm9, %vm1426_vm8  ;;  %vm1303_vm9 = vcmp.eq.f32.partialorder %v3666_v54, %v3406_v62  ;;  %vm790_vm8 = vcmp.lt.s32.totalorder %v724_v58, %v3409_v63 }
 0x325   : > { %vm2517_vm13 = vmpackc.low %vm1554_vm0, %vm1550_vm14  ;;  %vm1307_vm14 = vcmp.eq.f32.partialorder %v1011_v48, %v3406_v62 }
 0x326   : > { %2518 = vmatpush1.bf16.msk.msra.mxu0 %vm2517_vm13, %v3020_v24  ;;  %vm1424_vm12 = vmand %vm1296_vm1, %vm779_vm5  ;;  %vm1175_vm13 = vcmp.gt.f32.partialorder %v3666_v54, %v3406_v62  ;;  %vm1179_vm5 = vcmp.gt.f32.partialorder %v1011_v48, %v3406_v62 }
 0x327   : > { %vm1428_vm6 = vmand %vm1300_vm2, %vm783_vm3 }
 0x328   : > { %vm1552_vm7 = vmor %vm1168_vm11, %vm1424_vm12  ;;  %vm788_vm11 = vcmp.lt.s32.totalorder %v723_v57, %v3414_v4 }
 0x329   : > { %vm1556_vm10 = vmor %vm1172_vm4, %vm1428_vm6  ;;  %vm1305_vm4 = vcmp.eq.f32.partialorder %v3666_v54, %v3416_v5  ;;  %vm792_vm6 = vcmp.lt.s32.totalorder %v724_v58, %v3414_v4 }
 0x32a   : > { %vm2581_vm0 = vmpackc.low %vm1556_vm10, %vm1552_vm7  ;;  %vm1309_vm7 = vcmp.eq.f32.partialorder %v1011_v48, %v3416_v5 }
 0x32b   : > { %2582 = vmatpush1.bf16.msk.msra.mxu1 %vm2581_vm0, %v3020_v24  ;;  %vm1431_vm1 = vmand %vm1303_vm9, %vm786_vm15  ;;  %vm1177_vm0 = vcmp.gt.f32.partialorder %v3666_v54, %v3416_v5  ;;  %vm1181_vm15 = vcmp.gt.f32.partialorder %v1011_v48, %v3416_v5 }
 0x32c   : > { %vm1435_vm3 = vmand %vm1307_vm14, %vm790_vm8 }
 0x32d   : > { %vm1559_vm2 = vmor %vm1175_vm13, %vm1431_vm1  ;;  %vm785_vm13 = vcmp.lt.s32.totalorder %v723_v57, %v3398_v7 }
 0x32e   : > { %vm1563_vm12 = vmor %vm1179_vm5, %vm1435_vm3  ;;  %vm1302_vm5 = vcmp.eq.f32.partialorder %v3666_v54, %v3421_v2  ;;  %vm789_vm3 = vcmp.lt.s32.totalorder %v724_v58, %v3398_v7 }
 0x32f   : > { %vm2519_vm10 = vmpackc.low %vm1563_vm12, %vm1559_vm2  ;;  %vm1306_vm2 = vcmp.eq.f32.partialorder %v1011_v48, %v3421_v2 }
 0x330   : > { %2520 = vmatprep.subr.msk.bf16.mxu0 %vm2519_vm10, %v3020_v24  ;;  %vm1433_vm9 = vmand %vm1305_vm4, %vm788_vm11  ;;  %vm1174_vm10 = vcmp.gt.f32.partialorder %v3666_v54, %v3421_v2  ;;  %vm1178_vm11 = vcmp.gt.f32.partialorder %v1011_v48, %v3421_v2 }
 0x331   : > { %vm1437_vm8 = vmand %vm1309_vm7, %vm792_vm6 }
 0x332   : > { %vm1561_vm14 = vmor %vm1177_vm0, %vm1433_vm9  ;;  %vm787_vm0 = vcmp.lt.s32.totalorder %v723_v57, %v3429_v9 }
 0x333   : > { %vm1565_vm1 = vmor %vm1181_vm15, %vm1437_vm8  ;;  %vm1304_vm15 = vcmp.eq.f32.partialorder %v3666_v54, %v3431_v14  ;;  %vm791_vm8 = vcmp.lt.s32.totalorder %v724_v58, %v3429_v9  ;;  %v710_v58 = vadd.s32 240, %v3389_v23 }
 0x334   : > { %vm2583_vm12 = vmpackc.low %vm1565_vm1, %vm1561_vm14  ;;  %vm1308_vm14 = vcmp.eq.f32.partialorder %v1011_v48, %v3431_v14 }
 0x335   : > { %2584 = vmatprep.subr.msk.bf16.mxu1 %vm2583_vm12, %v3020_v24  ;;  %vm1430_vm4 = vmand %vm1302_vm5, %vm785_vm13  ;;  %vm1176_vm13 = vcmp.gt.f32.partialorder %v3666_v54, %v3431_v14  ;;  %vm1180_vm5 = vcmp.gt.f32.partialorder %v1011_v48, %v3431_v14  ;;  %v741_v54 = vadd.s32 %v3401_v20, %v708_v52  ;;  %v711_v48 = vadd.s32 248, %v3389_v23 }
 0x336   : > { %vm1434_vm6 = vmand %vm1306_vm2, %vm789_vm3 }
 0x337   : > { %vm1558_vm7 = vmor %vm1174_vm10, %vm1430_vm4  ;;  %vm794_vm10 = vcmp.lt.s32.totalorder %v725_v19, %v3409_v63  ;;  %v744_v50 = vadd.s32 %v3401_v20, %v711_v48 }
 0x338   : > { %vm1562_vm9 = vmor %vm1178_vm11, %vm1434_vm6  ;;  %vm1311_vm11 = vcmp.eq.f32.partialorder %v3708_v59, %v3406_v62  ;;  %vm798_vm6 = vcmp.lt.s32.totalorder %v726_v61, %v3409_v63 }
 0x339   : > { %vm2521_vm1 = vmpackc.low %vm1562_vm9, %vm1558_vm7  ;;  %vm1315_vm7 = vcmp.eq.f32.partialorder %v1021_v0, %v3406_v62 }
 0x33a   : > { %2522 = vmatpush1.bf16.msk.msra.mxu0 %vm2521_vm1, %v3020_v24  ;;  %vm1432_vm3 = vmand %vm1304_vm15, %vm787_vm0  ;;  %vm1183_vm1 = vcmp.gt.f32.partialorder %v3708_v59, %v3406_v62  ;;  %vm1187_vm0 = vcmp.gt.f32.partialorder %v1021_v0, %v3406_v62 }
 0x33b   : > { %vm1436_vm2 = vmand %vm1308_vm14, %vm791_vm8 }
 0x33c   : > { %vm1560_vm12 = vmor %vm1176_vm13, %vm1432_vm3  ;;  %vm796_vm13 = vcmp.lt.s32.totalorder %v725_v19, %v3414_v4 }
 0x33d   : > { %vm1564_vm4 = vmor %vm1180_vm5, %vm1436_vm2  ;;  %vm1313_vm5 = vcmp.eq.f32.partialorder %v3708_v59, %v3416_v5  ;;  %vm800_vm2 = vcmp.lt.s32.totalorder %v726_v61, %v3414_v4 }
 0x33e   : > { %vm2585_vm9 = vmpackc.low %vm1564_vm4, %vm1560_vm12  ;;  %vm1317_vm12 = vcmp.eq.f32.partialorder %v1021_v0, %v3416_v5 }
 0x33f   : > { %2586 = vmatpush1.bf16.msk.msra.mxu1 %vm2585_vm9, %v3020_v24  ;;  %vm1439_vm15 = vmand %vm1311_vm11, %vm794_vm10  ;;  %vm1185_vm9 = vcmp.gt.f32.partialorder %v3708_v59, %v3416_v5  ;;  %vm1189_vm10 = vcmp.gt.f32.partialorder %v1021_v0, %v3416_v5 }
 0x340   : > { %vm1443_vm8 = vmand %vm1315_vm7, %vm798_vm6 }
 0x341   : > { %vm1567_vm14 = vmor %vm1183_vm1, %vm1439_vm15  ;;  %vm793_vm1 = vcmp.lt.s32.totalorder %v725_v19, %v3398_v7 }
 0x342   : > { %vm1571_vm3 = vmor %vm1187_vm0, %vm1443_vm8  ;;  %vm1310_vm0 = vcmp.eq.f32.partialorder %v3708_v59, %v3421_v2  ;;  %vm797_vm8 = vcmp.lt.s32.totalorder %v726_v61, %v3398_v7 }
 0x343   : > { %vm2523_vm4 = vmpackc.low %vm1571_vm3, %vm1567_vm14  ;;  %vm1314_vm14 = vcmp.eq.f32.partialorder %v1021_v0, %v3421_v2 }
 0x344   : > { %2524 = vmatprep.subr.msk.bf16.mxu0 %vm2523_vm4, %v3020_v24  ;;  %vm1441_vm11 = vmand %vm1313_vm5, %vm796_vm13  ;;  %vm1182_vm4 = vcmp.gt.f32.partialorder %v3708_v59, %v3421_v2  ;;  %vm1186_vm13 = vcmp.gt.f32.partialorder %v1021_v0, %v3421_v2 }
 0x345   : > { %vm1445_vm6 = vmand %vm1317_vm12, %vm800_vm2 }
 0x346   : > { %vm1569_vm7 = vmor %vm1185_vm9, %vm1441_vm11  ;;  %vm795_vm9 = vcmp.lt.s32.totalorder %v725_v19, %v3429_v9 }
 0x347   : > { %vm1573_vm15 = vmor %vm1189_vm10, %vm1445_vm6  ;;  %vm1312_vm10 = vcmp.eq.f32.partialorder %v3708_v59, %v3431_v14  ;;  %vm799_vm6 = vcmp.lt.s32.totalorder %v726_v61, %v3429_v9 }
 0x348   : > { %vm2587_vm3 = vmpackc.low %vm1573_vm15, %vm1569_vm7  ;;  %vm1316_vm7 = vcmp.eq.f32.partialorder %v1021_v0, %v3431_v14 }
 0x349   : > { %2588 = vmatprep.subr.msk.bf16.mxu1 %vm2587_vm3, %v3020_v24  ;;  %vm1438_vm5 = vmand %vm1310_vm0, %vm793_vm1  ;;  %vm1184_vm1 = vcmp.gt.f32.partialorder %v3708_v59, %v3431_v14  ;;  %vm1188_vm0 = vcmp.gt.f32.partialorder %v1021_v0, %v3431_v14  ;;  %v743_v59 = vadd.s32 %v3401_v20, %v710_v58 }
 0x34a   : > { %vm1442_vm2 = vmand %vm1314_vm14, %vm797_vm8 }
 0x34b   : > { %vm1566_vm12 = vmor %vm1182_vm4, %vm1438_vm5  ;;  %vm802_vm4 = vcmp.lt.s32.totalorder %v3764_v10, %v3409_v63 }
 0x34c   : > { %vm1570_vm11 = vmor %vm1186_vm13, %vm1442_vm2  ;;  %vm1319_vm13 = vcmp.eq.f32.partialorder %v3750_v1, %v3406_v62  ;;  %vm806_vm2 = vcmp.lt.s32.totalorder %v728_v11, %v3409_v63 }
 0x34d   : > { %vm2525_vm15 = vmpackc.low %vm1570_vm11, %vm1566_vm12  ;;  %vm1323_vm12 = vcmp.eq.f32.partialorder %v1031_v12, %v3406_v62 }
 0x34e   : > { %2526 = vmatpush1.bf16.msk.msra.mxu0 %vm2525_vm15, %v3020_v24  ;;  %vm1440_vm8 = vmand %vm1312_vm10, %vm795_vm9  ;;  %vm1191_vm15 = vcmp.gt.f32.partialorder %v3750_v1, %v3406_v62  ;;  %vm1195_vm9 = vcmp.gt.f32.partialorder %v1031_v12, %v3406_v62 }
 0x34f   : > { %vm1444_vm14 = vmand %vm1316_vm7, %vm799_vm6 }
 0x350   : > { %vm1568_vm3 = vmor %vm1184_vm1, %vm1440_vm8  ;;  %vm804_vm1 = vcmp.lt.s32.totalorder %v3764_v10, %v3414_v4 }
 0x351   : > { %vm1572_vm5 = vmor %vm1188_vm0, %vm1444_vm14  ;;  %vm1321_vm0 = vcmp.eq.f32.partialorder %v3750_v1, %v3416_v5  ;;  %vm808_vm14 = vcmp.lt.s32.totalorder %v728_v11, %v3414_v4 }
 0x352   : > { %vm2589_vm11 = vmpackc.low %vm1572_vm5, %vm1568_vm3  ;;  %vm1325_vm3 = vcmp.eq.f32.partialorder %v1031_v12, %v3416_v5 }
 0x353   : > { %2590 = vmatpush1.bf16.msk.msra.mxu1 %vm2589_vm11, %v3020_v24  ;;  %vm1447_vm10 = vmand %vm1319_vm13, %vm802_vm4  ;;  %vm1193_vm4 = vcmp.gt.f32.partialorder %v3750_v1, %v3416_v5  ;;  %vm1197_vm13 = vcmp.gt.f32.partialorder %v1031_v12, %v3416_v5 }
 0x354   : > { %vm1451_vm6 = vmand %vm1323_vm12, %vm806_vm2 }
 0x355   : > { %vm1575_vm7 = vmor %vm1191_vm15, %vm1447_vm10  ;;  %vm801_vm15 = vcmp.lt.s32.totalorder %v3764_v10, %v3398_v7  ;;  %vm810_vm10 = vcmp.lt.s32.totalorder %v3789_v16, %v3409_v63 }
 0x356   : > { %vm1579_vm8 = vmor %vm1195_vm9, %vm1451_vm6  ;;  %vm1318_vm9 = vcmp.eq.f32.partialorder %v3750_v1, %v3421_v2  ;;  %vm1327_vm6 = vcmp.eq.f32.partialorder %v3436_v15, %v3406_v62 }
 0x357   : > { %vm2527_vm5 = vmpackc.low %vm1579_vm8, %vm1575_vm7  ;;  %vm805_vm8 = vcmp.lt.s32.totalorder %v728_v11, %v3398_v7 }
 0x358   : > { %2528 = vmatprep.subr.msk.bf16.mxu0 %vm2527_vm5, %v3020_v24  ;;  %vm1449_vm2 = vmand %vm1321_vm0, %vm804_vm1  ;;  %vm1322_vm5 = vcmp.eq.f32.partialorder %v1031_v12, %v3421_v2  ;;  %vm1190_vm0 = vcmp.gt.f32.partialorder %v3750_v1, %v3421_v2 }
 0x359   : > { %vm1453_vm12 = vmand %vm1325_vm3, %vm808_vm14  ;;  %vm1194_vm14 = vcmp.gt.f32.partialorder %v1031_v12, %v3421_v2 }
 0x35a   : > { %vm1577_vm11 = vmor %vm1193_vm4, %vm1449_vm2 }
 0x35b   : > { %vm1581_vm7 = vmor %vm1197_vm13, %vm1453_vm12  ;;  %vm803_vm12 = vcmp.lt.s32.totalorder %v3764_v10, %v3429_v9 }
 0x35c   : > { %vm2591_vm1 = vmpackc.low %vm1581_vm7, %vm1577_vm11  ;;  %vm1320_vm11 = vcmp.eq.f32.partialorder %v3750_v1, %v3431_v14 }
 0x35d   : > { %2592 = vmatprep.subr.msk.bf16.mxu1 %vm2591_vm1, %v3020_v24  ;;  %vm1446_vm3 = vmand %vm1318_vm9, %vm801_vm15  ;;  %vm807_vm1 = vcmp.lt.s32.totalorder %v728_v11, %v3429_v9  ;;  %vm1324_vm9 = vcmp.eq.f32.partialorder %v1031_v12, %v3431_v14  ;;  %v2048_v11 = vld [vmem:[#allocation3] sm:$0xf] }
 0x35e   : > { %vm3810_vm4 = vmand %vm1327_vm6, %vm810_vm10  ;;  %vm1192_vm10 = vcmp.gt.f32.partialorder %v3750_v1, %v3431_v14  ;;  %vm1196_vm6 = vcmp.gt.f32.partialorder %v1031_v12, %v3431_v14 }
 0x35f   : > { %v4322_v17 = vsel %vm3810_vm4, 4294967295, %v4321_v17  ;;  %vm1450_vm13 = vmand %vm1322_vm5, %vm805_vm8  ;;  %vm1199_vm4 = vcmp.gt.f32.partialorder %v3436_v15, %v3406_v62 }
 0x360   : > { %vm1574_vm2 = vmor %vm1190_vm0, %vm1446_vm3  ;;  %vm1331_vm3 = vcmp.eq.f32.partialorder %v1041_v22, %v3406_v62 }
 0x361   : > { %vm1578_vm7 = vmor %vm1194_vm14, %vm1450_vm13  ;;  %vm814_vm14 = vcmp.lt.s32.totalorder %v730_v18, %v3409_v63 }
 0x362   : > { %vm2529_vm15 = vmpackc.low %vm1578_vm7, %vm1574_vm2  ;;  %vm1203_vm7 = vcmp.gt.f32.partialorder %v1041_v22, %v3406_v62 }
 0x363   : > { %2530 = vmatpush1.bf16.msk.msra.mxu0 %vm2529_vm15, %v3020_v24  ;;  %vm1448_vm8 = vmand %vm1320_vm11, %vm803_vm12  ;;  %vm4323_vm11 = vnez %v4322_v17 }
 0x364   : > { %vm1452_vm5 = vmand %vm1324_vm9, %vm807_vm1  ;;  %vm812_vm1 = vcmp.lt.s32.totalorder %v3789_v16, %v3414_v4  ;;  %vm1329_vm9 = vcmp.eq.f32.partialorder %v3436_v15, %v3416_v5 }
 0x365   : > { %vm1576_vm0 = vmor %vm1192_vm10, %vm1448_vm8  ;;  %vm1333_vm8 = vcmp.eq.f32.partialorder %v1041_v22, %v3416_v5 }
 0x366   : > { %vm1580_vm13 = vmor %vm1196_vm6, %vm1452_vm5  ;;  %vm816_vm6 = vcmp.lt.s32.totalorder %v730_v18, %v3414_v4 }
 0x367   : > { %vm2593_vm2 = vmpackc.low %vm1580_vm13, %vm1576_vm0  ;;  %vm1201_vm0 = vcmp.gt.f32.partialorder %v3436_v15, %v3416_v5 }
 0x368   : > { %2594 = vmatpush1.bf16.msk.msra.mxu1 %vm2593_vm2, %v3020_v24  ;;  %vm1459_vm15 = vmand %vm1331_vm3, %vm814_vm14  ;;  %vm1205_vm14 = vcmp.gt.f32.partialorder %v1041_v22, %v3416_v5  ;;  %vm809_vm2 = vcmp.lt.s32.totalorder %v3789_v16, %v3398_v7 }
 0x369   : > { %vm1583_vm12 = vmor %vm1199_vm4, %vm4323_vm11  ;;  %vm813_vm11 = vcmp.lt.s32.totalorder %v730_v18, %v3398_v7 }
 0x36a   : > { %vm1587_vm10 = vmor %vm1203_vm7, %vm1459_vm15  ;;  %vm1326_vm7 = vcmp.eq.f32.partialorder %v3436_v15, %v3421_v2 }
 0x36b   : > { %vm2531_vm5 = vmpackc.low %vm1587_vm10, %vm1583_vm12  ;;  %vm1330_vm12 = vcmp.eq.f32.partialorder %v1041_v22, %v3421_v2 }
 0x36c   : > { %2532 = vmatprep.subr.msk.bf16.mxu0 %vm2531_vm5, %v3020_v24  ;;  %vm1457_vm4 = vmand %vm1329_vm9, %vm812_vm1  ;;  %vm1198_vm5 = vcmp.gt.f32.partialorder %v3436_v15, %v3421_v2  ;;  %vm1202_vm1 = vcmp.gt.f32.partialorder %v1041_v22, %v3421_v2 }
 0x36d   : > { %vm1461_vm3 = vmand %vm1333_vm8, %vm816_vm6 }
 0x36e   : > { %vm1585_vm13 = vmor %vm1201_vm0, %vm1457_vm4  ;;  %vm811_vm0 = vcmp.lt.s32.totalorder %v3789_v16, %v3429_v9 }
 0x36f   : > { %vm1589_vm15 = vmor %vm1205_vm14, %vm1461_vm3  ;;  %vm1328_vm14 = vcmp.eq.f32.partialorder %v3436_v15, %v3431_v14  ;;  %vm815_vm3 = vcmp.lt.s32.totalorder %v730_v18, %v3429_v9 }
 0x370   : > { %vm2595_vm10 = vmpackc.low %vm1589_vm15, %vm1585_vm13  ;;  %vm1332_vm13 = vcmp.eq.f32.partialorder %v1041_v22, %v3431_v14 }
 0x371   : > { %2596 = vmatprep.subr.msk.bf16.mxu1 %vm2595_vm10, %v3020_v24  ;;  %vm1454_vm9 = vmand %vm1326_vm7, %vm809_vm2  ;;  %vm1200_vm2 = vcmp.gt.f32.partialorder %v3436_v15, %v3431_v14  ;;  %vm1204_vm7 = vcmp.gt.f32.partialorder %v1041_v22, %v3431_v14  ;;  %v700_v15 = vadd.s32 160, %v3389_v23 }
 0x372   : > { %vm1458_vm6 = vmand %vm1330_vm12, %vm813_vm11 }
 0x373   : > { %vm1582_vm8 = vmor %vm1198_vm5, %vm1454_vm9  ;;  %vm818_vm5 = vcmp.lt.s32.totalorder %v731_v28, %v3409_v63  ;;  %v733_v33 = vadd.s32 %v3401_v20, %v700_v15 }
 0x374   : > { %vm1586_vm4 = vmor %vm1202_vm1, %vm1458_vm6  ;;  %vm1335_vm1 = vcmp.eq.f32.partialorder %v3484_v26, %v3406_v62  ;;  %vm822_vm6 = vcmp.lt.s32.totalorder %v732_v30, %v3409_v63 }
 0x375   : > { %vm2533_vm15 = vmpackc.low %vm1586_vm4, %vm1582_vm8  ;;  %vm1339_vm8 = vcmp.eq.f32.partialorder %v3503_v29, %v3406_v62 }
 0x376   : > { %2534 = vmatpush1.bf16.msk.msra.mxu0 %vm2533_vm15, %v3020_v24  ;;  %vm1456_vm11 = vmand %vm1328_vm14, %vm811_vm0  ;;  %vm1207_vm15 = vcmp.gt.f32.partialorder %v3484_v26, %v3406_v62  ;;  %vm1211_vm0 = vcmp.gt.f32.partialorder %v3503_v29, %v3406_v62 }
 0x377   : > { %vm1460_vm12 = vmand %vm1332_vm13, %vm815_vm3 }
 0x378   : > { %vm1584_vm10 = vmor %vm1200_vm2, %vm1456_vm11  ;;  %vm820_vm2 = vcmp.lt.s32.totalorder %v731_v28, %v3414_v4 }
 0x379   : > { %vm1588_vm9 = vmor %vm1204_vm7, %vm1460_vm12  ;;  %vm1337_vm7 = vcmp.eq.f32.partialorder %v3484_v26, %v3416_v5  ;;  %vm824_vm12 = vcmp.lt.s32.totalorder %v732_v30, %v3414_v4 }
 0x37a   : > { %vm2597_vm4 = vmpackc.low %vm1588_vm9, %vm1584_vm10  ;;  %vm1341_vm10 = vcmp.eq.f32.partialorder %v3503_v29, %v3416_v5 }
 0x37b   : > { %2598 = vmatpush1.bf16.msk.msra.mxu1 %vm2597_vm4, %v3020_v24  ;;  %vm1463_vm14 = vmand %vm1335_vm1, %vm818_vm5  ;;  %vm1209_vm4 = vcmp.gt.f32.partialorder %v3484_v26, %v3416_v5  ;;  %vm1213_vm5 = vcmp.gt.f32.partialorder %v3503_v29, %v3416_v5 }
 0x37c   : > { %vm1467_vm3 = vmand %vm1339_vm8, %vm822_vm6 }
 0x37d   : > { %vm1591_vm13 = vmor %vm1207_vm15, %vm1463_vm14  ;;  %vm817_vm15 = vcmp.lt.s32.totalorder %v731_v28, %v3398_v7 }
 0x37e   : > { %vm1595_vm11 = vmor %vm1211_vm0, %vm1467_vm3  ;;  %vm1334_vm0 = vcmp.eq.f32.partialorder %v3484_v26, %v3421_v2  ;;  %vm821_vm3 = vcmp.lt.s32.totalorder %v732_v30, %v3398_v7 }
 0x37f   : > { %vm2535_vm9 = vmpackc.low %vm1595_vm11, %vm1591_vm13  ;;  %vm1338_vm13 = vcmp.eq.f32.partialorder %v3503_v29, %v3421_v2 }
 0x380   : > { %2536 = vmatprep.subr.msk.bf16.mxu0 %vm2535_vm9, %v3020_v24  ;;  %vm1465_vm1 = vmand %vm1337_vm7, %vm820_vm2  ;;  %vm1206_vm9 = vcmp.gt.f32.partialorder %v3484_v26, %v3421_v2  ;;  %vm1210_vm2 = vcmp.gt.f32.partialorder %v3503_v29, %v3421_v2 }
 0x381   : > { %vm1469_vm6 = vmand %vm1341_vm10, %vm824_vm12 }
 0x382   : > { %vm1593_vm8 = vmor %vm1209_vm4, %vm1465_vm1  ;;  %vm819_vm4 = vcmp.lt.s32.totalorder %v731_v28, %v3429_v9 }
 0x383   : > { %vm1597_vm14 = vmor %vm1213_vm5, %vm1469_vm6  ;;  %vm1336_vm5 = vcmp.eq.f32.partialorder %v3484_v26, %v3431_v14  ;;  %vm823_vm6 = vcmp.lt.s32.totalorder %v732_v30, %v3429_v9 }
 0x384   : > { %vm2599_vm11 = vmpackc.low %vm1597_vm14, %vm1593_vm8  ;;  %vm1340_vm8 = vcmp.eq.f32.partialorder %v3503_v29, %v3431_v14  ;;  %vm1212_vm14 = vcmp.gt.f32.partialorder %v3503_v29, %v3431_v14  ;;  %v703_v29 = vadd.s32 184, %v3389_v23 }
 0x385   : > { %2600 = vmatprep.subr.msk.bf16.mxu1 %vm2599_vm11, %v3020_v24  ;;  %vm1462_vm7 = vmand %vm1334_vm0, %vm817_vm15  ;;  %vm1208_vm0 = vcmp.gt.f32.partialorder %v3484_v26, %v3431_v14  ;;  %v702_v26 = vadd.s32 176, %v3389_v23 }
 0x386   : > { %vm1466_vm12 = vmand %vm1338_vm13, %vm821_vm3  ;;  %v736_v38 = vadd.s32 %v3401_v20, %v703_v29 }
 0x387   : > { %vm1590_vm10 = vmor %vm1206_vm9, %vm1462_vm7  ;;  %vm826_vm9 = vcmp.lt.s32.totalorder %v733_v33, %v3409_v63  ;;  %v735_v36 = vadd.s32 %v3401_v20, %v702_v26 }
 0x388   : > { %vm1594_vm1 = vmor %vm1210_vm2, %vm1466_vm12  ;;  %vm1343_vm2 = vcmp.eq.f32.partialorder %v3528_v32, %v3406_v62  ;;  %vm830_vm12 = vcmp.lt.s32.totalorder %v734_v35, %v3409_v63 }
 0x389   : > { %vm2537_vm15 = vmpackc.low %vm1594_vm1, %vm1590_vm10  ;;  %vm1347_vm10 = vcmp.eq.f32.partialorder %v3548_v37, %v3406_v62 }
 0x38a   : > { %2538 = vmatpush1.bf16.msk.msra.mxu0 %vm2537_vm15, %v3020_v24  ;;  %vm1464_vm3 = vmand %vm1336_vm5, %vm819_vm4  ;;  %vm1215_vm15 = vcmp.gt.f32.partialorder %v3528_v32, %v3406_v62  ;;  %vm1219_vm4 = vcmp.gt.f32.partialorder %v3548_v37, %v3406_v62 }
 0x38b   : > { %vm1468_vm13 = vmand %vm1340_vm8, %vm823_vm6 }
 0x38c   : > { %vm1592_vm11 = vmor %vm1208_vm0, %vm1464_vm3  ;;  %vm828_vm0 = vcmp.lt.s32.totalorder %v733_v33, %v3414_v4 }
 0x38d   : > { %vm1596_vm7 = vmor %vm1212_vm14, %vm1468_vm13  ;;  %vm1345_vm14 = vcmp.eq.f32.partialorder %v3528_v32, %v3416_v5  ;;  %vm832_vm13 = vcmp.lt.s32.totalorder %v734_v35, %v3414_v4 }
 0x38e   : > { %vm2601_vm1 = vmpackc.low %vm1596_vm7, %vm1592_vm11  ;;  %vm1349_vm11 = vcmp.eq.f32.partialorder %v3548_v37, %v3416_v5 }
 0x38f   : > { %2602 = vmatpush1.bf16.msk.msra.mxu1 %vm2601_vm1, %v3020_v24  ;;  %vm1471_vm5 = vmand %vm1343_vm2, %vm826_vm9  ;;  %vm1217_vm1 = vcmp.gt.f32.partialorder %v3528_v32, %v3416_v5  ;;  %vm1221_vm9 = vcmp.gt.f32.partialorder %v3548_v37, %v3416_v5 }
 0x390   : > { %vm1475_vm6 = vmand %vm1347_vm10, %vm830_vm12 }
 0x391   : > { %vm1599_vm8 = vmor %vm1215_vm15, %vm1471_vm5  ;;  %vm825_vm15 = vcmp.lt.s32.totalorder %v733_v33, %v3398_v7 }
 0x392   : > { %vm1603_vm3 = vmor %vm1219_vm4, %vm1475_vm6  ;;  %vm1342_vm4 = vcmp.eq.f32.partialorder %v3528_v32, %v3421_v2  ;;  %vm829_vm6 = vcmp.lt.s32.totalorder %v734_v35, %v3398_v7 }
 0x393   : > { %vm2539_vm7 = vmpackc.low %vm1603_vm3, %vm1599_vm8  ;;  %vm1346_vm8 = vcmp.eq.f32.partialorder %v3548_v37, %v3421_v2 }
 0x394   : > { %2540 = vmatprep.subr.msk.bf16.mxu0 %vm2539_vm7, %v3020_v24  ;;  %vm1473_vm2 = vmand %vm1345_vm14, %vm828_vm0  ;;  %vm1214_vm7 = vcmp.gt.f32.partialorder %v3528_v32, %v3421_v2  ;;  %vm1218_vm0 = vcmp.gt.f32.partialorder %v3548_v37, %v3421_v2 }
 0x395   : > { %vm1477_vm12 = vmand %vm1349_vm11, %vm832_vm13 }
 0x396   : > { %vm1601_vm10 = vmor %vm1217_vm1, %vm1473_vm2  ;;  %vm827_vm1 = vcmp.lt.s32.totalorder %v733_v33, %v3429_v9 }
 0x397   : > { %vm1605_vm5 = vmor %vm1221_vm9, %vm1477_vm12  ;;  %vm1344_vm9 = vcmp.eq.f32.partialorder %v3528_v32, %v3431_v14  ;;  %vm831_vm12 = vcmp.lt.s32.totalorder %v734_v35, %v3429_v9 }
 0x398   : > { %vm2603_vm3 = vmpackc.low %vm1605_vm5, %vm1601_vm10  ;;  %vm1348_vm10 = vcmp.eq.f32.partialorder %v3548_v37, %v3431_v14 }
 0x399   : > { %2604 = vmatprep.subr.msk.bf16.mxu1 %vm2603_vm3, %v3020_v24  ;;  %vm1470_vm14 = vmand %vm1342_vm4, %vm825_vm15  ;;  %vm1216_vm15 = vcmp.gt.f32.partialorder %v3528_v32, %v3431_v14  ;;  %vm1220_vm4 = vcmp.gt.f32.partialorder %v3548_v37, %v3431_v14  ;;  %v3993_v32 = vpop.permute.xlu1 %1075  ;;  %v704_v37 = vadd.s32 192, %v3389_v23 }
 0x39a   : > { %vm1474_vm13 = vmand %vm1346_vm8, %vm829_vm6 }
 0x39b   : > { %vm1598_vm11 = vmor %vm1214_vm7, %vm1470_vm14  ;;  %vm834_vm7 = vcmp.lt.s32.totalorder %v735_v36, %v3409_v63  ;;  %v737_v41 = vadd.s32 %v3401_v20, %v704_v37 }
 0x39c   : > { %vm1602_vm2 = vmor %vm1218_vm0, %vm1474_vm13  ;;  %vm1351_vm0 = vcmp.eq.f32.partialorder %v3579_v39, %v3406_v62  ;;  %vm838_vm13 = vcmp.lt.s32.totalorder %v736_v38, %v3409_v63 }
 0x39d   : > { %vm2541_vm5 = vmpackc.low %vm1602_vm2, %vm1598_vm11  ;;  %vm1355_vm11 = vcmp.eq.f32.partialorder %v3611_v45, %v3406_v62  ;;  %v1081_v43 = vpop.permute.xlu1 %1080 }
 0x39e   : > { %2542 = vmatpush1.bf16.msk.msra.mxu0 %vm2541_vm5, %v3020_v24  ;;  %vm1472_vm6 = vmand %vm1344_vm9, %vm827_vm1  ;;  %vm1223_vm5 = vcmp.gt.f32.partialorder %v3579_v39, %v3406_v62  ;;  %vm1227_vm1 = vcmp.gt.f32.partialorder %v3611_v45, %v3406_v62 }
 0x39f   : > { %vm1476_vm8 = vmand %vm1348_vm10, %vm831_vm12 }
 0x3a0   : > { %vm1600_vm3 = vmor %vm1216_vm15, %vm1472_vm6  ;;  %vm836_vm15 = vcmp.lt.s32.totalorder %v735_v36, %v3414_v4 }
 0x3a1   : > { %vm1604_vm14 = vmor %vm1220_vm4, %vm1476_vm8  ;;  %vm1353_vm4 = vcmp.eq.f32.partialorder %v3579_v39, %v3416_v5  ;;  %vm840_vm8 = vcmp.lt.s32.totalorder %v736_v38, %v3414_v4 }
 0x3a2   : > { %vm2605_vm2 = vmpackc.low %vm1604_vm14, %vm1600_vm3  ;;  %vm1357_vm3 = vcmp.eq.f32.partialorder %v3611_v45, %v3416_v5 }
 0x3a3   : > { %2606 = vmatpush1.bf16.msk.msra.mxu1 %vm2605_vm2, %v3020_v24  ;;  %vm1479_vm9 = vmand %vm1351_vm0, %vm834_vm7  ;;  %vm1225_vm2 = vcmp.gt.f32.partialorder %v3579_v39, %v3416_v5  ;;  %vm1229_vm7 = vcmp.gt.f32.partialorder %v3611_v45, %v3416_v5 }
 0x3a4   : > { %vm1483_vm12 = vmand %vm1355_vm11, %vm838_vm13 }
 0x3a5   : > { %vm1607_vm10 = vmor %vm1223_vm5, %vm1479_vm9  ;;  %vm833_vm5 = vcmp.lt.s32.totalorder %v735_v36, %v3398_v7 }
 0x3a6   : > { %vm1611_vm6 = vmor %vm1227_vm1, %vm1483_vm12  ;;  %vm1350_vm1 = vcmp.eq.f32.partialorder %v3579_v39, %v3421_v2  ;;  %vm837_vm12 = vcmp.lt.s32.totalorder %v736_v38, %v3398_v7 }
 0x3a7   : > { %vm2543_vm14 = vmpackc.low %vm1611_vm6, %vm1607_vm10  ;;  %vm1354_vm10 = vcmp.eq.f32.partialorder %v3611_v45, %v3421_v2 }
 0x3a8   : > { %2544 = vmatprep.subr.msk.bf16.mxu0 %vm2543_vm14, %v3020_v24  ;;  %vm1481_vm0 = vmand %vm1353_vm4, %vm836_vm15  ;;  %vm1222_vm14 = vcmp.gt.f32.partialorder %v3579_v39, %v3421_v2  ;;  %vm1226_vm15 = vcmp.gt.f32.partialorder %v3611_v45, %v3421_v2 }
 0x3a9   : > { %vm1485_vm13 = vmand %vm1357_vm3, %vm840_vm8 }
 0x3aa   : > { %vm1609_vm11 = vmor %vm1225_vm2, %vm1481_vm0  ;;  %vm835_vm2 = vcmp.lt.s32.totalorder %v735_v36, %v3429_v9 }
 0x3ab   : > { %vm1613_vm9 = vmor %vm1229_vm7, %vm1485_vm13  ;;  %vm1352_vm7 = vcmp.eq.f32.partialorder %v3579_v39, %v3431_v14  ;;  %vm839_vm13 = vcmp.lt.s32.totalorder %v736_v38, %v3429_v9 }
 0x3ac   : > { %vm2607_vm6 = vmpackc.low %vm1613_vm9, %vm1609_vm11  ;;  %vm1356_vm11 = vcmp.eq.f32.partialorder %v3611_v45, %v3431_v14 }
 0x3ad   : > { %2608 = vmatprep.subr.msk.bf16.mxu1 %vm2607_vm6, %v3020_v24  ;;  %vm1478_vm4 = vmand %vm1350_vm1, %vm833_vm5  ;;  %vm1224_vm5 = vcmp.gt.f32.partialorder %v3579_v39, %v3431_v14  ;;  %vm1228_vm1 = vcmp.gt.f32.partialorder %v3611_v45, %v3431_v14  ;;  %v4038_v39 = vpop.permute.xlu1 %1085  ;;  %v707_v45 = vadd.s32 216, %v3389_v23 }
 0x3ae   : > { %vm1482_vm8 = vmand %vm1354_vm10, %vm837_vm12 }
 0x3af   : > { %vm1606_vm3 = vmor %vm1222_vm14, %vm1478_vm4  ;;  %vm842_vm14 = vcmp.lt.s32.totalorder %v737_v41, %v3409_v63  ;;  %v740_v47 = vadd.s32 %v3401_v20, %v707_v45 }
 0x3b0   : > { %vm1610_vm0 = vmor %vm1226_vm15, %vm1482_vm8  ;;  %vm1359_vm15 = vcmp.eq.f32.partialorder %v3993_v32, %v3406_v62  ;;  %vm846_vm8 = vcmp.lt.s32.totalorder %v738_v42, %v3409_v63 }
 0x3b1   : > { %vm2545_vm9 = vmpackc.low %vm1610_vm0, %vm1606_vm3  ;;  %vm1363_vm3 = vcmp.eq.f32.partialorder %v1081_v43, %v3406_v62  ;;  %v1091_v49 = vpop.permute.xlu1 %1090 }
 0x3b2   : > { %2546 = vmatpush1.bf16.msk.msra.mxu0 %vm2545_vm9, %v3020_v24  ;;  %vm1480_vm12 = vmand %vm1352_vm7, %vm835_vm2  ;;  %vm1231_vm9 = vcmp.gt.f32.partialorder %v3993_v32, %v3406_v62  ;;  %vm1235_vm2 = vcmp.gt.f32.partialorder %v1081_v43, %v3406_v62 }
 0x3b3   : > { %vm1484_vm10 = vmand %vm1356_vm11, %vm839_vm13 }
 0x3b4   : > { %vm1608_vm6 = vmor %vm1224_vm5, %vm1480_vm12  ;;  %vm844_vm5 = vcmp.lt.s32.totalorder %v737_v41, %v3414_v4 }
 0x3b5   : > { %vm1612_vm4 = vmor %vm1228_vm1, %vm1484_vm10  ;;  %vm1361_vm1 = vcmp.eq.f32.partialorder %v3993_v32, %v3416_v5  ;;  %vm848_vm10 = vcmp.lt.s32.totalorder %v738_v42, %v3414_v4  ;;  %v4080_v51 = vpop.permute.xlu1 %1095 }
 0x3b6   : > { %vm2609_vm0 = vmpackc.low %vm1612_vm4, %vm1608_vm6  ;;  %vm1365_vm6 = vcmp.eq.f32.partialorder %v1081_v43, %v3416_v5 }
 0x3b7   : > { %2610 = vmatpush1.bf16.msk.msra.mxu1 %vm2609_vm0, %v3020_v24  ;;  %vm1487_vm7 = vmand %vm1359_vm15, %vm842_vm14  ;;  %vm1233_vm0 = vcmp.gt.f32.partialorder %v3993_v32, %v3416_v5  ;;  %vm1237_vm14 = vcmp.gt.f32.partialorder %v1081_v43, %v3416_v5 }
 0x3b8   : > { %vm1491_vm13 = vmand %vm1363_vm3, %vm846_vm8 }
 0x3b9   : > { %vm1615_vm11 = vmor %vm1231_vm9, %vm1487_vm7  ;;  %vm841_vm9 = vcmp.lt.s32.totalorder %v737_v41, %v3398_v7  ;;  %v1101_v56 = vpop.permute.xlu1 %1100 }
 0x3ba   : > { %vm1619_vm12 = vmor %vm1235_vm2, %vm1491_vm13  ;;  %vm1358_vm2 = vcmp.eq.f32.partialorder %v3993_v32, %v3421_v2  ;;  %vm845_vm13 = vcmp.lt.s32.totalorder %v738_v42, %v3398_v7 }
 0x3bb   : > { %vm2547_vm4 = vmpackc.low %vm1619_vm12, %vm1615_vm11  ;;  %vm1362_vm11 = vcmp.eq.f32.partialorder %v1081_v43, %v3421_v2 }
 0x3bc   : > { %2548 = vmatprep.subr.msk.bf16.mxu0 %vm2547_vm4, %v3020_v24  ;;  %vm1489_vm15 = vmand %vm1361_vm1, %vm844_vm5  ;;  %vm1230_vm4 = vcmp.gt.f32.partialorder %v3993_v32, %v3421_v2  ;;  %vm1234_vm5 = vcmp.gt.f32.partialorder %v1081_v43, %v3421_v2 }
 0x3bd   : > { %vm1493_vm8 = vmand %vm1365_vm6, %vm848_vm10  ;;  %v4122_v57 = vpop.permute.xlu1 %1105 }
 0x3be   : > { %vm1617_vm3 = vmor %vm1233_vm0, %vm1489_vm15  ;;  %vm843_vm0 = vcmp.lt.s32.totalorder %v737_v41, %v3429_v9 }
 0x3bf   : > { %vm1621_vm7 = vmor %vm1237_vm14, %vm1493_vm8  ;;  %vm1360_vm14 = vcmp.eq.f32.partialorder %v3993_v32, %v3431_v14  ;;  %vm847_vm8 = vcmp.lt.s32.totalorder %v738_v42, %v3429_v9 }
 0x3c0   : > { %vm2611_vm12 = vmpackc.low %vm1621_vm7, %vm1617_vm3  ;;  %vm1364_vm3 = vcmp.eq.f32.partialorder %v1081_v43, %v3431_v14 }
 0x3c1   : > { %2612 = vmatprep.subr.msk.bf16.mxu1 %vm2611_vm12, %v3020_v24  ;;  %vm1486_vm1 = vmand %vm1358_vm2, %vm841_vm9  ;;  %vm1232_vm9 = vcmp.gt.f32.partialorder %v3993_v32, %v3431_v14  ;;  %vm1236_vm2 = vcmp.gt.f32.partialorder %v1081_v43, %v3431_v14  ;;  %v1111_v60 = vpop.permute.xlu1 %1110 }
 0x3c2   : > { %vm1490_vm10 = vmand %vm1362_vm11, %vm845_vm13 }
 0x3c3   : > { %vm1614_vm6 = vmor %vm1230_vm4, %vm1486_vm1  ;;  %vm850_vm4 = vcmp.lt.s32.totalorder %v739_v46, %v3409_v63 }
 0x3c4   : > { %vm1618_vm15 = vmor %vm1234_vm5, %vm1490_vm10  ;;  %vm1367_vm5 = vcmp.eq.f32.partialorder %v4038_v39, %v3406_v62  ;;  %vm854_vm10 = vcmp.lt.s32.totalorder %v740_v47, %v3409_v63 }
 0x3c5   : > { %vm2549_vm7 = vmpackc.low %vm1618_vm15, %vm1614_vm6  ;;  %vm1371_vm6 = vcmp.eq.f32.partialorder %v1091_v49, %v3406_v62 }
 0x3c6   : > { %2550 = vmatpush1.bf16.msk.msra.mxu0 %vm2549_vm7, %v3020_v24  ;;  %vm1488_vm13 = vmand %vm1360_vm14, %vm843_vm0  ;;  %vm1239_vm7 = vcmp.gt.f32.partialorder %v4038_v39, %v3406_v62  ;;  %vm1243_vm0 = vcmp.gt.f32.partialorder %v1091_v49, %v3406_v62 }
 0x3c7   : > { %vm1492_vm11 = vmand %vm1364_vm3, %vm847_vm8 }
 0x3c8   : > { %vm1616_vm12 = vmor %vm1232_vm9, %vm1488_vm13  ;;  %vm852_vm9 = vcmp.lt.s32.totalorder %v739_v46, %v3414_v4 }
 0x3c9   : > { %vm1620_vm1 = vmor %vm1236_vm2, %vm1492_vm11  ;;  %vm1369_vm2 = vcmp.eq.f32.partialorder %v4038_v39, %v3416_v5  ;;  %vm856_vm11 = vcmp.lt.s32.totalorder %v740_v47, %v3414_v4 }
 0x3ca   : > { %vm2613_vm15 = vmpackc.low %vm1620_vm1, %vm1616_vm12  ;;  %vm1373_vm12 = vcmp.eq.f32.partialorder %v1091_v49, %v3416_v5 }
 0x3cb   : > { %2614 = vmatpush1.bf16.msk.msra.mxu1 %vm2613_vm15, %v3020_v24  ;;  %vm1495_vm14 = vmand %vm1367_vm5, %vm850_vm4  ;;  %vm1241_vm15 = vcmp.gt.f32.partialorder %v4038_v39, %v3416_v5  ;;  %vm1245_vm4 = vcmp.gt.f32.partialorder %v1091_v49, %v3416_v5 }
 0x3cc   : > { %vm1499_vm8 = vmand %vm1371_vm6, %vm854_vm10 }
 0x3cd   : > { %vm1623_vm3 = vmor %vm1239_vm7, %vm1495_vm14  ;;  %vm849_vm7 = vcmp.lt.s32.totalorder %v739_v46, %v3398_v7 }
 0x3ce   : > { %vm1627_vm13 = vmor %vm1243_vm0, %vm1499_vm8  ;;  %vm1366_vm0 = vcmp.eq.f32.partialorder %v4038_v39, %v3421_v2  ;;  %vm853_vm8 = vcmp.lt.s32.totalorder %v740_v47, %v3398_v7 }
 0x3cf   : > { %vm2551_vm1 = vmpackc.low %vm1627_vm13, %vm1623_vm3  ;;  %vm1370_vm3 = vcmp.eq.f32.partialorder %v1091_v49, %v3421_v2 }
 0x3d0   : > { %2552 = vmatprep.subr.msk.bf16.mxu0 %vm2551_vm1, %v3020_v24  ;;  %vm1497_vm5 = vmand %vm1369_vm2, %vm852_vm9  ;;  %vm1238_vm1 = vcmp.gt.f32.partialorder %v4038_v39, %v3421_v2  ;;  %vm1242_vm9 = vcmp.gt.f32.partialorder %v1091_v49, %v3421_v2 }
 0x3d1   : > { %vm1501_vm10 = vmand %vm1373_vm12, %vm856_vm11 }
 0x3d2   : > { %vm1625_vm6 = vmor %vm1241_vm15, %vm1497_vm5  ;;  %vm851_vm15 = vcmp.lt.s32.totalorder %v739_v46, %v3429_v9 }
 0x3d3   : > { %vm1629_vm14 = vmor %vm1245_vm4, %vm1501_vm10  ;;  %vm1368_vm4 = vcmp.eq.f32.partialorder %v4038_v39, %v3431_v14  ;;  %vm855_vm10 = vcmp.lt.s32.totalorder %v740_v47, %v3429_v9 }
 0x3d4   : > { %vm2615_vm13 = vmpackc.low %vm1629_vm14, %vm1625_vm6  ;;  %vm1372_vm6 = vcmp.eq.f32.partialorder %v1091_v49, %v3431_v14 }
 0x3d5   : > { %2616 = vmatprep.subr.msk.bf16.mxu1 %vm2615_vm13, %v3020_v24  ;;  %vm1494_vm2 = vmand %vm1366_vm0, %vm849_vm7  ;;  %vm1240_vm7 = vcmp.gt.f32.partialorder %v4038_v39, %v3431_v14  ;;  %vm1244_vm0 = vcmp.gt.f32.partialorder %v1091_v49, %v3431_v14 }
 0x3d6   : > { %vm1498_vm11 = vmand %vm1370_vm3, %vm853_vm8 }
 0x3d7   : > { %vm1622_vm12 = vmor %vm1238_vm1, %vm1494_vm2  ;;  %vm858_vm1 = vcmp.lt.s32.totalorder %v741_v54, %v3409_v63 }
 0x3d8   : > { %vm1626_vm5 = vmor %vm1242_vm9, %vm1498_vm11  ;;  %vm1375_vm9 = vcmp.eq.f32.partialorder %v4080_v51, %v3406_v62  ;;  %vm862_vm11 = vcmp.lt.s32.totalorder %v742_v55, %v3409_v63 }
 0x3d9   : > { %vm2553_vm14 = vmpackc.low %vm1626_vm5, %vm1622_vm12  ;;  %vm1379_vm12 = vcmp.eq.f32.partialorder %v1101_v56, %v3406_v62 }
 0x3da   : > { %2554 = vmatpush1.bf16.msk.msra.mxu0 %vm2553_vm14, %v3020_v24  ;;  %vm1496_vm8 = vmand %vm1368_vm4, %vm851_vm15  ;;  %vm1247_vm14 = vcmp.gt.f32.partialorder %v4080_v51, %v3406_v62  ;;  %vm1251_vm15 = vcmp.gt.f32.partialorder %v1101_v56, %v3406_v62 }
 0x3db   : > { %vm1500_vm3 = vmand %vm1372_vm6, %vm855_vm10 }
 0x3dc   : > { %vm1624_vm13 = vmor %vm1240_vm7, %vm1496_vm8  ;;  %vm860_vm7 = vcmp.lt.s32.totalorder %v741_v54, %v3414_v4 }
 0x3dd   : > { %vm1628_vm2 = vmor %vm1244_vm0, %vm1500_vm3  ;;  %vm1377_vm0 = vcmp.eq.f32.partialorder %v4080_v51, %v3416_v5  ;;  %vm864_vm3 = vcmp.lt.s32.totalorder %v742_v55, %v3414_v4 }
 0x3de   : > { %vm2617_vm5 = vmpackc.low %vm1628_vm2, %vm1624_vm13  ;;  %vm1381_vm13 = vcmp.eq.f32.partialorder %v1101_v56, %v3416_v5 }
 0x3df   : > { %2618 = vmatpush1.bf16.msk.msra.mxu1 %vm2617_vm5, %v3020_v24  ;;  %vm1503_vm4 = vmand %vm1375_vm9, %vm858_vm1  ;;  %vm1249_vm5 = vcmp.gt.f32.partialorder %v4080_v51, %v3416_v5  ;;  %vm1253_vm1 = vcmp.gt.f32.partialorder %v1101_v56, %v3416_v5 }
 0x3e0   : > { %vm1507_vm10 = vmand %vm1379_vm12, %vm862_vm11 }
 0x3e1   : > { %vm1631_vm6 = vmor %vm1247_vm14, %vm1503_vm4  ;;  %vm857_vm14 = vcmp.lt.s32.totalorder %v741_v54, %v3398_v7 }
 0x3e2   : > { %vm1635_vm8 = vmor %vm1251_vm15, %vm1507_vm10  ;;  %vm1374_vm15 = vcmp.eq.f32.partialorder %v4080_v51, %v3421_v2  ;;  %vm861_vm10 = vcmp.lt.s32.totalorder %v742_v55, %v3398_v7 }
 0x3e3   : > { %vm2555_vm2 = vmpackc.low %vm1635_vm8, %vm1631_vm6  ;;  %vm1378_vm6 = vcmp.eq.f32.partialorder %v1101_v56, %v3421_v2 }
 0x3e4   : > { %2556 = vmatprep.subr.msk.bf16.mxu0 %vm2555_vm2, %v3020_v24  ;;  %vm1505_vm9 = vmand %vm1377_vm0, %vm860_vm7  ;;  %vm1246_vm2 = vcmp.gt.f32.partialorder %v4080_v51, %v3421_v2  ;;  %vm1250_vm7 = vcmp.gt.f32.partialorder %v1101_v56, %v3421_v2 }
 0x3e5   : > { %vm1509_vm11 = vmand %vm1381_vm13, %vm864_vm3 }
 0x3e6   : > { %vm1633_vm12 = vmor %vm1249_vm5, %vm1505_vm9  ;;  %vm859_vm5 = vcmp.lt.s32.totalorder %v741_v54, %v3429_v9 }
 0x3e7   : > { %vm1637_vm4 = vmor %vm1253_vm1, %vm1509_vm11  ;;  %vm1376_vm1 = vcmp.eq.f32.partialorder %v4080_v51, %v3431_v14  ;;  %vm863_vm11 = vcmp.lt.s32.totalorder %v742_v55, %v3429_v9 }
 0x3e8   : > { %vm2619_vm8 = vmpackc.low %vm1637_vm4, %vm1633_vm12  ;;  %vm1380_vm12 = vcmp.eq.f32.partialorder %v1101_v56, %v3431_v14 }
 0x3e9   : > { %2620 = vmatprep.subr.msk.bf16.mxu1 %vm2619_vm8, %v3020_v24  ;;  %vm1502_vm0 = vmand %vm1374_vm15, %vm857_vm14  ;;  %vm1248_vm14 = vcmp.gt.f32.partialorder %v4080_v51, %v3431_v14  ;;  %vm1252_vm15 = vcmp.gt.f32.partialorder %v1101_v56, %v3431_v14 }
 0x3ea   : > { %vm1506_vm3 = vmand %vm1378_vm6, %vm861_vm10 }
 0x3eb   : > { %vm1630_vm13 = vmor %vm1246_vm2, %vm1502_vm0  ;;  %vm866_vm2 = vcmp.lt.s32.totalorder %v743_v59, %v3409_v63 }
 0x3ec   : > { %vm1634_vm9 = vmor %vm1250_vm7, %vm1506_vm3  ;;  %vm1383_vm7 = vcmp.eq.f32.partialorder %v4122_v57, %v3406_v62  ;;  %vm870_vm3 = vcmp.lt.s32.totalorder %v744_v50, %v3409_v63 }
 0x3ed   : > { %vm2557_vm4 = vmpackc.low %vm1634_vm9, %vm1630_vm13  ;;  %vm1387_vm13 = vcmp.eq.f32.partialorder %v1111_v60, %v3406_v62 }
 0x3ee   : > { %2558 = vmatpush1.bf16.msk.msra.mxu0 %vm2557_vm4, %v3020_v24  ;;  %vm1504_vm10 = vmand %vm1376_vm1, %vm859_vm5  ;;  %vm1255_vm4 = vcmp.gt.f32.partialorder %v4122_v57, %v3406_v62  ;;  %vm1259_vm5 = vcmp.gt.f32.partialorder %v1111_v60, %v3406_v62 }
 0x3ef   : > { %vm1508_vm6 = vmand %vm1380_vm12, %vm863_vm11 }
 0x3f0   : > { %vm1632_vm8 = vmor %vm1248_vm14, %vm1504_vm10  ;;  %vm868_vm14 = vcmp.lt.s32.totalorder %v743_v59, %v3414_v4 }
 0x3f1   : > { %vm1636_vm0 = vmor %vm1252_vm15, %vm1508_vm6  ;;  %vm1385_vm15 = vcmp.eq.f32.partialorder %v4122_v57, %v3416_v5  ;;  %vm872_vm6 = vcmp.lt.s32.totalorder %v744_v50, %v3414_v4 }
 0x3f2   : > { %vm2621_vm9 = vmpackc.low %vm1636_vm0, %vm1632_vm8  ;;  %vm1389_vm8 = vcmp.eq.f32.partialorder %v1111_v60, %v3416_v5 }
 0x3f3   : > { %2622 = vmatpush1.bf16.msk.msra.mxu1 %vm2621_vm9, %v3020_v24  ;;  %vm1511_vm1 = vmand %vm1383_vm7, %vm866_vm2  ;;  %vm1257_vm9 = vcmp.gt.f32.partialorder %v4122_v57, %v3416_v5  ;;  %vm1261_vm2 = vcmp.gt.f32.partialorder %v1111_v60, %v3416_v5 }
 0x3f4   : > { %vm1515_vm11 = vmand %vm1387_vm13, %vm870_vm3 }
 0x3f5   : > { %vm1639_vm12 = vmor %vm1255_vm4, %vm1511_vm1  ;;  %vm865_vm4 = vcmp.lt.s32.totalorder %v743_v59, %v3398_v7 }
 0x3f6   : > { %vm1643_vm10 = vmor %vm1259_vm5, %vm1515_vm11  ;;  %vm1382_vm5 = vcmp.eq.f32.partialorder %v4122_v57, %v3421_v2  ;;  %vm869_vm11 = vcmp.lt.s32.totalorder %v744_v50, %v3398_v7  ;;  %v3022_v7 = vmov 1966171168  }
 0x3f7   : > { %vm2559_vm0 = vmpackc.low %vm1643_vm10, %vm1639_vm12  ;;  %vm1386_vm12 = vcmp.eq.f32.partialorder %v1111_v60, %v3421_v2  ;;  %v2056_v20 = vunpack.c.l.s4 %v3022_v7 }
 0x3f8   : > { %2560 = vmatprep.subr.msk.bf16.mxu0 %vm2559_vm0, %v3020_v24  ;;  %vm1513_vm7 = vmand %vm1385_vm15, %vm868_vm14  ;;  %vm1254_vm0 = vcmp.gt.f32.partialorder %v4122_v57, %v3421_v2  ;;  %vm1258_vm14 = vcmp.gt.f32.partialorder %v1111_v60, %v3421_v2 }
 0x3f9   : > { %vm1517_vm3 = vmand %vm1389_vm8, %vm872_vm6  ;;  %v2057_v62 = vunpack.c.0.s8 %v2056_v20 }
 0x3fa   : > { %vm1641_vm13 = vmor %vm1257_vm9, %vm1513_vm7  ;;  %vm867_vm9 = vcmp.lt.s32.totalorder %v743_v59, %v3429_v9 }
 0x3fb   : > { %vm1645_vm1 = vmor %vm1261_vm2, %vm1517_vm3  ;;  %vm1384_vm2 = vcmp.eq.f32.partialorder %v4122_v57, %v3431_v14  ;;  %vm871_vm3 = vcmp.lt.s32.totalorder %v744_v50, %v3429_v9  ;;  %v2060_v9 = vsub.s32 %v2057_v62, %v3389_v23 }
 0x3fc   : > { %vm2623_vm10 = vmpackc.low %vm1645_vm1, %vm1641_vm13  ;;  %vm1388_vm13 = vcmp.eq.f32.partialorder %v1111_v60, %v3431_v14 }
 0x3fd   : > { %2624 = vmatprep.subr.msk.bf16.mxu1 %vm2623_vm10, %v3020_v24  ;;  %vm1510_vm15 = vmand %vm1382_vm5, %vm865_vm4  ;;  %vm1256_vm10 = vcmp.gt.f32.partialorder %v4122_v57, %v3431_v14  ;;  %vm1260_vm4 = vcmp.gt.f32.partialorder %v1111_v60, %v3431_v14 }
 0x3fe   : > { %vm1514_vm6 = vmand %vm1386_vm12, %vm869_vm11 }
 0x3ff   : > { %vm1638_vm8 = vmor %vm1254_vm0, %vm1510_vm15 }
 0x400   : > { %vm1642_vm7 = vmor %vm1258_vm14, %vm1514_vm6  ;;  %vm2081_vm14 = vcmp.lt.s32.totalorder %v674_v21, 512 }
 0x401   : > { %vm2561_vm1 = vmpackc.low %vm1642_vm7, %vm1638_vm8 }
 0x402   : > { %2562 = vmatpush1.bf16.msk.msra.mxu0 %vm2561_vm1, %v3020_v24  ;;  %vm1512_vm5 = vmand %vm1384_vm2, %vm867_vm9 }
 0x403   : > { %vm1516_vm11 = vmand %vm1388_vm13, %vm871_vm3 }
 0x404   : > { %vm1640_vm12 = vmor %vm1256_vm10, %vm1512_vm5 }
 0x405   : > { %vm1644_vm0 = vmor %vm1260_vm4, %vm1516_vm11  ;;  %1999 = vmatmul.mubr.bf16.vlgmr.msra.gmra.mrb[0].mxu0 %v3021_v34 }
 0x406   : > { %vm2625_vm15 = vmpackc.low %vm1644_vm0, %vm1640_vm12 }
 0x407   : > { %2626 = vmatpush1.bf16.msk.msra.mxu1 %vm2625_vm15, %v3020_v24 }
 0x40a   : > { %2040 = vmatmul.mubr.bf16.vlgmr.msra.gmra.mrb[0].mxu1 %v3021_v34 }
 0x4d8   : > { %v2000_v63 = vpop.f32.mrb[0].mxu0 }
 0x4d9   : > { %v2002_v4 = vpop.f32.mrb[1].mxu0 }
 0x4da   : > { %v2053_v5 = vcombine.low %v2000_v63, %v2002_v4  ;;  %v2004_v2 = vpop.f32.mrb[2].mxu0 }
 0x4db   : > { %v2005_v14 = vpop.f32.mrb[3].mxu0 }
 0x4dc   : > { %v2061_v0 = vrot.slane %v2053_v5, %v2060_v9 }
 0x4dd   : > { %v2041_v19 = vpop.f32.mrb[0].mxu1 }
 0x4de   : > { %v2043_v61 = vpop.f32.mrb[1].mxu1 }
 0x4df   : > { %v2054_v1 = vcombine.low %v2041_v19, %v2043_v61  ;;  %v2045_v6 = vpop.f32.mrb[2].mxu1 }
 0x4e0   : > { %v2046_v8 = vpop.f32.mrb[3].mxu1 }
 0x4e1   : > { %v2068_v10 = vrot.slane %v2054_v1, %v2060_v9 }
 0x4e3   : > { %v2069_v24 = vcombine.low %v2061_v0, %v2068_v10 }
 0x4e5   : > { %v2076_v12 = vrot.slane %v2069_v24, %v2060_v9 }
 0x4e7   : > { %v2078_v13 = vadd.f32 %v2076_v12, %v2048_v11 }
 0x4e9   : > { %2083 = vst.msk [vmem:[#allocation3] sm:$0xf] %vm2081_vm14, %v2078_v13 }
 0x4ea PF: > { %p2084_p4 = scmp.eq.s32.totalorder %s2986_s21, 1 }
 0x4ec   : > { %p2085_p0 = pnand %p2084_p4, %p670_p13 }
 0x4ed   : > { %v2089_v23 = vld [vmem:[#allocation5] sm:$0x1] (!%p2085_p0)  ;;  %v3023_v16 = vmov (!%p2085_p0), 0   ;;  %v2141_v18 = vld [vmem:[#allocation4] sm:$0x1] (!%p2085_p0)  ;;  %v2098_v22 = vlaneseq (!%p2085_p0)  ;;  %vm2127_vm8 = vcmask (!%p2085_p0), 1040384  }
 0x4ee   : > { %2088 = sbr.rel (%p2085_p0) target bundleno = 1689 (0x699), region = 64  ;;  %2776 = vset.pattern.permute.xlu0 (!%p2085_p0), %v3023_v16  ;;  %v2090_v3 = vmul.f32 (!%p2085_p0), 3.0, %v2089_v23  ;;  %2777 = vset.pattern.permute.xlu1 (!%p2085_p0), %v3023_v16  ;;  %v2103_v30 = vld [vmem:[#allocation2] sm:$0xf] (!%p2085_p0)  ;;  %v2105_v44 = vld [vmem:[#allocation6] sm:$0x1] (!%p2085_p0) }
 0x4ef   : > { %2144 = vperm.xlu1 (!%p2085_p0), %2777, %v2141_v18   ;;  %v2099_v21 = vshrl.u32 (!%p2085_p0), %v2098_v22, 7  ;;  %v2139_v49 = vand.u32 (!%p2085_p0), 127, %v2098_v22 }
 0x4f0   : > { %v2091_v17 = vmin.f32 (!%p2085_p0), %v2090_v3, 383.0  ;;  %v2092_v27 = vld [vmem:[#allocation3] sm:$0xf] (!%p2085_p0) }
 0x4f1   : > { %v2100_v25 = vsub.s32 (!%p2085_p0), 0, %v2099_v21  ;;  %v2113_v15 = vsub.s32 (!%p2085_p0), 1, %v2099_v21  ;;  %v2117_v33 = vsub.s32 (!%p2085_p0), 2, %v2099_v21  ;;  %v2121_v34 = vsub.s32 (!%p2085_p0), 3, %v2099_v21 }
 0x4f2   : > { %2095 = vperm.xlu0 (!%p2085_p0), %2776, %v2091_v17   ;;  %vm2152_vm9 = vcmp.eq.s32.totalorder (!%p2085_p0), %v2139_v49, 1  ;;  %vm2140_vm2 = vcmp.eq.s32.totalorder (!%p2085_p0), %v2139_v49, 0  ;;  %vm2164_vm7 = vcmp.eq.s32.totalorder (!%p2085_p0), %v2139_v49, 2 }
 0x56e   : > { %v2145_v47 = vpop.permute.xlu1 %2144 }
 0x56f   : > { %v2150_v52 = vrot.slane %v2145_v47, %v2100_v25 }
 0x571   : > { %v2096_v28 = vpop.permute.xlu0 %2095  ;;  %v2151_v56 = vsel %vm2140_vm2, %v2150_v52, 0.0 }
 0x572   : > { %v2101_v31 = vrot.slane %v2096_v28, %v2100_v25 }
 0x574   : > { %vm2102_vm6 = vcmp.lt.f32.partialorder %v2092_v27, %v2101_v31 }
 0x575   : > { %v2104_v35 = vsel %vm2102_vm6, %v2103_v30, 0.0 }
 0x576   : > { %v2110_v26 = vrot.slane %v2104_v35, %v2100_v25  ;;  %v2114_v29 = vrot.slane %v2104_v35, %v2113_v15  ;;  %v2118_v36 = vrot.slane %v2104_v35, %v2117_v33  ;;  %v2122_v38 = vrot.slane %v2104_v35, %v2121_v34 }
 0x578   : > { %v2128_v32 = vsel %vm2127_vm8, %v2110_v26, 0.0  ;;  %v2129_v37 = vsel %vm2127_vm8, %v2114_v29, 0.0  ;;  %v2131_v41 = vsel %vm2127_vm8, %v2118_v36, 0.0  ;;  %v2133_v43 = vsel %vm2127_vm8, %v2122_v38, 0.0 }
 0x579   : > { %v2130_v40 = vadd.f32 %v2129_v37, %v2128_v32 }
 0x57b   : > { %v2132_v42 = vadd.f32 %v2131_v41, %v2130_v40 }
 0x57d   : > { %v2134_v39 = vadd.f32 %v2133_v43, %v2132_v42 }
 0x57f   : > { %2135 = vadd.xlane.f32.xlu0 %v2134_v39 }
 0x60c   : > { %v2136_v45 = vpop.xlane.xlu0 %2135 }
 0x60d   : > { %v2137_v46 = vadd.f32 %v2136_v45, %v2105_v44 }
 0x60f   : > { %2155 = vperm.xlu1 %2777, %v2137_v46  }
 0x613   : > { %2167 = vperm.xlu1 %2777, %v2089_v23  }
 0x68e   : > { %v2156_v51 = vpop.permute.xlu1 %2155 }
 0x68f   : > { %v2161_v53 = vrot.slane %v2156_v51, %v2100_v25 }
 0x691   : > { %v2162_v54 = vsel %vm2152_vm9, %v2161_v53, 0.0 }
 0x692   : > { %v2168_v55 = vpop.permute.xlu1 %2167  ;;  %v2163_v58 = vadd.f32 %v2162_v54, %v2151_v56 }
 0x693   : > { %v2173_v57 = vrot.slane %v2168_v55, %v2100_v25 }
 0x695   : > { %v2174_v48 = vsel %vm2164_vm7, %v2173_v57, 0.0 }
 0x696   : > { %v2175_v59 = vadd.f32 %v2174_v48, %v2163_v58 }
 0x698   : > { %2176 = vst [vmem:[%s3325_s26] sm:$0x1] %v2175_v59 }
 0x699 PF: > { %s2627_s21 = sshll.u32 %s2994_s23, 4  ;;  %s2190_s25 = sshll.u32 %s3325_s26, 4  ;;  %s2191_s25 = int_to_ptr.vmem [resolvable:$true] %s2190_s25 }
 0x69a   : > { %s4190_s29 = scalar_lea.hbm %s4265_s4, %s2627_s21  ;;  %s2178_s28 = scalar_lea.sflag [#allocation9], %s367_s7 }
 0x69b   : > { %s2868_s24 = scalar_lea.vmem %s2191_s25, 16  ;;  %p4324_p9 = scmp.ne.s32.totalorder %s4294_s10, 0 }
 0x69c   : > { %p2869_p6 = scmp.ne.s32.totalorder %s2191_s25, %s2868_s24  ;;  %s3024_s6 = smov [#allocation13]  }
 0x69d   : > { %s2872_s11 = sshll.u32 %s3024_s6, 4  ;;  %s2873_s11 = int_to_ptr.vmem [resolvable:$false] %s2872_s11 }
 0x69e   : > { %p2870_p3 = pnand %p2869_p6, %p4324_p9  ;;  %s2874_s13 = scalar_lea.vmem %s2873_s11, 32 }
 0x69f   : > { %p2875_p2 = scmp.lt.s32.totalorder %s2191_s25, %s2873_s11  ;;  %p2876_p11 = scmp.lt.s32.totalorder %s2874_s13, %s2868_s24 }
 0x6a0   : > { %p2871_p7 = pneg %p2870_p3 }
 0x6a1   : > { %p2877_p12 = por %p2876_p11, %p2875_p2 }
 0x6a3   : > { %p2878_p5 = pnand %p2877_p12, %p2871_p7 }
 0x6a5   : > { %2881 = shalt.err (!%p2878_p5)
}
 0x6a6   : > { %s2882_s23 = scalar_lea.hbm %s4190_s29, 16  ;;  %s2886_s17 = scalar_lea.hbm %s4265_s4, 32 }
 0x6a7   : > { %p2883_p10 = scmp.ne.s32.totalorder %s4190_s29, %s2882_s23  ;;  %p2887_p1 = scmp.lt.u32.totalorder %s4190_s29, %s4265_s4 }
 0x6a8   : > { %p2888_p4 = scmp.lt.u32.totalorder %s2886_s17, %s2882_s23  ;;  %p2890_p6 = scmp.lt.u32.totalorder %s2882_s23, %s4190_s29 }
 0x6a9   : > { %p2884_p8 = pnand %p2883_p10, %p4324_p9 }
 0x6aa   : > { %p2889_p0 = por %p2888_p4, %p2887_p1 }
 0x6ab   : > { %p2885_p13 = pneg %p2884_p8 }
 0x6ac   : > { %p2891_p3 = por %p2890_p6, %p2889_p0 }
 0x6ae   : > { %p2892_p7 = pnand %p2891_p3, %p2885_p13 }
 0x6b0   : > { %2895 = shalt.err (!%p2892_p7)
}
 0x6b1   : > { %2636 = dma.vmem_to_hbm [thread:$0]  (%p4324_p9), %s2191_s25, 16, %s4190_s29, %s2178_s28  }
 0x6b2 PF: > { %s4325_s12 = sld [smem:[#allocation17_spill]]  ;;  %s4326_s9 = sld [smem:[#allocation28_spill]] }
 0x6b3   : > { %p2653_p2 = scmp.ge.s32.totalorder %s3010_s27, 2 }
 0x6b8   : > { %s2202_s26 = sand.u32 1, %s4325_s12   ;;  %p4327_p11 = scmp.ne.s32.totalorder %s4326_s9, 0 }
 0x6b9   : > { %s2203_s5 = scalar_lea.sflag [#allocation9], %s2202_s26 }
 0x6ba   : > { %p2649_p12 = pnand %p2653_p2, %p4327_p11 }
 0x6bc   : > { %2957 = dma.done.wait (!%p2649_p12), %s2203_s5, 16  }
 0x6bd   : > { %2959 = vsyncadd (!%p2649_p12), %s2203_s5, 4294967280  ;;  %s23_s27 = sadd.s32 1, %s3010_s27   ;;  %s4329_s10 = sld [smem:[#allocation18_spill]] }
 0x6be   : > { %p4217_p5 = scmp.ge.s32.totalorder %s23_s27, 10   ;;  %s4330_s17 = sld [smem:[#allocation26_spill]] }
 0x6bf   : > { %s4331_s20 = sld [smem:[#allocation19_spill]]  ;;  %s4333_s21 = sld [smem:[#allocation20_spill]] }
 0x6c0   : > { %s4332_s8 = sld [smem:[#allocation27_spill]]  ;;  %s4334_s22 = sld [smem:[#allocation21_spill]] }
 0x6c1   : > { %s4335_s23 = sld [smem:[#allocation22_spill]]  ;;  %s4336_s24 = sld [smem:[#allocation23_spill]] }
 0x6c2   : > { %s4337_s25 = sld [smem:[#allocation24_spill]]  ;;  %s4338_s26 = sld [smem:[#allocation25_spill]] }
 0x6c3   : > { %s4340_s15 = smov %s2966_s16  ;;  %s4341_s16 = smov %s4329_s10 }
 0x6c4   : > { %s4342_s18 = smov %s2978_s19  ;;  %22 = sbr.rel (!%p4217_p5) target bundleno = 14 (0xe), region = 126 }
 0x6c5   : > { %s4343_s19 = smov %s4331_s20 }
 0x6c6   : > { %s4344_s20 = smov %s4332_s8 }
 0x6cb   :  { %2207 = vsyncpa [#allocation8], 1 }
 0x6cc   :  { %2209 = vsyncpa [#allocation8 + $0x1], 1 }
 0x6cd   :  { %2210 = vsyncpa [#allocation11], 1 }
 0x6ce   :  { %2212 = vsyncpa [#allocation11 + $0x1], 1 }
 0x6cf   :  { %2213 = vsyncpa [#allocation9], 1 }
 0x6d0   :  { %2215 = vsyncpa [#allocation9 + $0x1], 1 }

</bundles_post_ra>
